<compile_context>
chip_gen: v7x
topology: tpu7x:2x2x1
jax: 0.10.0
libtpu: 0.0.40
codegen_flags: <defaults>
</compile_context>

<pallas_src>
import jax
import jax.numpy as jnp
import numpy as np
from jax.experimental import pallas as pl
from jax.experimental.pallas import tpu as pltpu


# ----------------------------- Pallas kernel --------------------------------
def nids_kernel(x_ref,
                w1_ref, b1_ref,
                w2_ref, b2_ref,
                w3_ref, b3_ref,
                w4_ref, b4_ref,
                o_ref):
    """Fused 4-layer MLP (eval BN folded into weights; dropout = identity)."""
    x = x_ref[...].astype(w1_ref.dtype)          # in-VMEM cast; no extra HBM pass

    # Layer 1: Linear(F,128) + ReLU   (BN1 folded into w2/b2)
    h = jnp.dot(x, w1_ref[...], preferred_element_type=jnp.float32) + b1_ref[...]
    h = jnp.maximum(h, 0.0)

    # Layer 2: Linear(128,64) + ReLU  (BN2 folded into w3/b3)
    h = jnp.dot(h.astype(w2_ref.dtype), w2_ref[...],
                preferred_element_type=jnp.float32) + b2_ref[...]
    h = jnp.maximum(h, 0.0)

    # Layer 3: Linear(64,32) + ReLU   (BN3 folded into w4/b4)
    h = jnp.dot(h.astype(w3_ref.dtype), w3_ref[...],
                preferred_element_type=jnp.float32) + b3_ref[...]
    h = jnp.maximum(h, 0.0)

    # Head Linear(32,1): VPU multiply + cross-lane reduce, written lane-dense.
    # w4_ref is the (1, 32) weight row; b4_ref is a (1, 1) scalar.
    o = jnp.sum(h * w4_ref[...], axis=-1)[None, :] + b4_ref[...]   # (1, tile_b)
    o_ref[...] = o.astype(o_ref.dtype)


# --------------------------- hardware-aware helpers --------------------------
def _device_kind():
    try:
        return jax.devices()[0].device_kind.lower()
    except Exception:
        return ""


def _num_tensorcores():
    # v7x exposes 2 TensorCores per chip; v5e/v6e have 1.
    return 2 if "v7" in _device_kind() else 1


def _vmem_budget_bytes():
    try:
        cap = int(pltpu.get_tpu_info().vmem_capacity_bytes)
    except Exception:
        cap = 64 << 20                           # conservative (v7x per-core VMEM)
    return max(cap - (16 << 20), 24 << 20)       # leave headroom for the rest of XLA


def _choose_tile(B, tile_b, num_tc):
    """Pick (tile_b, grid_b): big tiles; no split on 1-TC chips; even split on v7x."""
    tile_b = max(128, (int(tile_b) // 128) * 128)
    if num_tc >= 2 and B >= 256:
        # v7x: split the "parallel" batch axis into an even number of tiles so
        # both TensorCores get the same amount of work.
        grid_b = max(2, pl.cdiv(B, tile_b))
        grid_b += grid_b % 2
        tile_b = ((pl.cdiv(B, grid_b) + 127) // 128) * 128
        return tile_b, pl.cdiv(B, tile_b)
    if B <= tile_b:
        return B, 1                              # one tile == whole batch, no split
    return tile_b, pl.cdiv(B, tile_b)


# ------------------------------ Python wrapper -------------------------------
def nids_forward(x, params, *, tile_b=1024, vmem_limit_bytes=None):
    """x: (B, F). params: fold_params() output. Returns (B, 1) float32."""
    B, F = x.shape
    w1, b1 = params["w1"], params["b1"]
    w2, b2 = params["w2"], params["b2"]
    w3, b3 = params["w3"], params["b3"]
    w4, b4 = params["w4"], params["b4"]          # w4: (1, 32) row; b4: (1, 1)

    tile_b, grid_b = _choose_tile(B, tile_b, _num_tensorcores())
    B_out = grid_b * tile_b                      # output row padded; x is NOT padded

    # --- VMEM budget (only matters for very large tiles / very wide F) ---------
    param_bytes = sum(int(np.prod(a.shape)) * a.dtype.itemsize
                      for a in (w1, b1, w2, b2, w3, b3, w4, b4))
    est = (2 * tile_b * F * x.dtype.itemsize     # double-buffered x tile
           + 2 * tile_b * 4                      # double-buffered output row
           + 2 * param_bytes                     # resident params
           + 6 * tile_b * 128 * 4)               # live f32 activations + headroom
    if vmem_limit_bytes is None and est > (24 << 20):
        vmem_limit_bytes = int(min(est + (8 << 20), _vmem_budget_bytes()))

    # --- specs -------------------------------------------------------------------
    in_specs = [pl.BlockSpec((tile_b, F), lambda i: (i, 0))]
    # Small parameter arrays stay fully resident in VMEM for every batch tile.
    # (For very wide F, pipeline_mode=pl.Buffered(1) on w1 would halve its
    #  resident VMEM; unnecessary at NIDS-scale feature counts.)
    in_specs += [pl.BlockSpec(a.shape, lambda i: (0, 0))
                 for a in (w1, b1, w2, b2, w3, b3, w4, b4)]
    # Lane-dense output: one (1, tile_b) lane-major block per grid step.
    out_specs = pl.BlockSpec((1, tile_b), lambda i: (0, i))

    out_row = pl.pallas_call(
        nids_kernel,
        out_shape=jax.ShapeDtypeStruct((1, B_out), jnp.float32),
        grid_spec=pltpu.PrefetchScalarGridSpec(
            num_scalar_prefetch=0,
            grid=(grid_b,),
            in_specs=in_specs,
            out_specs=out_specs,
        ),
        compiler_params=pltpu.CompilerParams(
            dimension_semantics=("parallel",),
            vmem_limit_bytes=vmem_limit_bytes,
        ),
    )(x, w1, b1, w2, b2, w3, b3, w4, b4)

    return out_row[0, :B][:, None]               # (B, 1), matching nn.Linear output


# --------------------------- deterministic params ----------------------------
def make_raw_params(input_size, key, eps=1e-5):
    """Raw PyTorch-like parameters (weights pre-transposed to (in, out))."""
    dims = [(input_size, 128), (128, 64), (64, 32), (32, 1)]
    keys = jax.random.split(key, 20)
    ki = 0
    raw = {"eps": eps}
    for li, (din, dout) in enumerate(dims, start=1):
        bound = 1.0 / np.sqrt(din)
        raw[f"w{li}"] = jax.random.uniform(keys[ki], (din, dout), jnp.float32, -bound, bound); ki += 1
        raw[f"b{li}"] = jax.random.uniform(keys[ki], (1, dout), jnp.float32, -bound, bound); ki += 1
        if li <= 3:   # BatchNorm1d after the first three (Linear, ReLU) pairs
            raw[f"g{li}"]    = 1.0 + 0.1 * jax.random.normal(keys[ki], (1, dout), jnp.float32); ki += 1
            raw[f"beta{li}"] = 0.1 * jax.random.normal(keys[ki], (1, dout), jnp.float32); ki += 1
            raw[f"m{li}"]    = 0.05 * jax.random.normal(keys[ki], (1, dout), jnp.float32); ki += 1
            raw[f"v{li}"]    = 1.0 + 0.1 * jax.random.uniform(keys[ki], (1, dout), jnp.float32); ki += 1
    return raw


def fold_params(raw, compute_dtype=jnp.bfloat16):
    """Fold eval-mode BN into the following Linear; cast MXU weights to compute_dtype."""
    eps = raw["eps"]
    scale, shift = {}, {}
    for li in (1, 2, 3):
        s = raw[f"g{li}"] / jnp.sqrt(raw[f"v{li}"] + eps)       # (1, dout)
        t = raw[f"beta{li}"] - raw[f"m{li}"] * s
        scale[li], shift[li] = s, t

    # (relu(h)*s + t) @ W + b == relu(h) @ (s^T * W) + (t @ W + b)   -- exact.
    w2f = scale[1].T * raw["w2"]
    w3f = scale[2].T * raw["w3"]
    w4f = scale[3].T * raw["w4"]                                # (32, 1)

    return {
        # MXU operands in compute_dtype (bf16 default); accumulation stays f32.
        "w1": raw["w1"].astype(compute_dtype),
        "w2": w2f.astype(compute_dtype),
        "w3": w3f.astype(compute_dtype),
        # Biases / head stay f32 (added after f32 accumulation).
        "b1": raw["b1"].astype(jnp.float32),
        "b2": (shift[1] @ raw["w2"] + raw["b2"]).astype(jnp.float32),
        "b3": (shift[2] @ raw["w3"] + raw["b3"]).astype(jnp.float32),
        "w4": w4f.T.astype(jnp.float32),                        # (1, 32) row for VPU head
        "b4": (shift[3] @ raw["w4"] + raw["b4"]).astype(jnp.float32),   # (1, 1)
    }


# ------------------------------ pure-JAX ref ---------------------------------
def nids_ref(x, raw):
    """Un-folded eval-mode reference (mirrors the PyTorch nn.Sequential)."""
    eps = raw["eps"]

    def bn(h, li):
        return ((h - raw[f"m{li}"]) / jnp.sqrt(raw[f"v{li}"] + eps)
                * raw[f"g{li}"] + raw[f"beta{li}"])

    h = bn(jnp.maximum(x @ raw["w1"] + raw["b1"], 0.0), 1)
    h = bn(jnp.maximum(h @ raw["w2"] + raw["b2"], 0.0), 2)
    h = bn(jnp.maximum(h @ raw["w3"] + raw["b3"], 0.0), 3)
    return h @ raw["w4"] + raw["b4"]


if __name__ == "__main__":
    key = jax.random.PRNGKey(0)
    kx, kp = jax.random.split(key)

    batch, input_size = 320, 64
    x = jax.random.normal(kx, (batch, input_size), dtype=jnp.float32)

    raw = make_raw_params(input_size, kp)
    ref = nids_ref(x, raw)

    # 1) Default bf16 path (MXU-native operands, f32 accumulation): loose tolerance.
    params_bf16 = fold_params(raw)
    out = jax.block_until_ready(nids_forward(x, params_bf16))
    np.testing.assert_allclose(np.asarray(out), np.asarray(ref), rtol=5e-2, atol=5e-2)

    # 2) f32 path: BN folding is exact -> tight tolerance.
    params_f32 = fold_params(raw, compute_dtype=jnp.float32)
    out32 = jax.block_until_ready(nids_forward(x, params_f32))
    np.testing.assert_allclose(np.asarray(out32), np.asarray(ref), rtol=2e-4, atol=2e-4)

    # 3) Ragged multi-tile path: no wrapper-side padding of x; boundary reads masked.
    out_r = jax.block_until_ready(nids_forward(x[:300], params_bf16, tile_b=128))
    np.testing.assert_allclose(np.asarray(out_r), np.asarray(ref[:300]),
                               rtol=5e-2, atol=5e-2)

    print("KERNEL_OK")
</pallas_src>

<mosaic_0001>
module attributes {stable_mosaic.version = 11 : i64} {
  func.func @nids_kernel(%arg0: i32, %arg1: memref<320x64xf32, #tpu.memory_space<vmem>>, %arg2: memref<64x128xbf16, #tpu.memory_space<vmem>>, %arg3: memref<1x128xf32, #tpu.memory_space<vmem>>, %arg4: memref<128x64xbf16, #tpu.memory_space<vmem>>, %arg5: memref<1x64xf32, #tpu.memory_space<vmem>>, %arg6: memref<64x32xbf16, #tpu.memory_space<vmem>>, %arg7: memref<1x32xf32, #tpu.memory_space<vmem>>, %arg8: memref<1x32xf32, #tpu.memory_space<vmem>>, %arg9: memref<1x1xf32, #tpu.memory_space<vmem>>, %arg10: memref<1x320xf32, #tpu.memory_space<vmem>>) attributes {dimension_semantics = [#tpu.dimension_semantics<parallel>], iteration_bounds = array<i64: 1>, scalar_prefetch = 0 : i64, scratch_operands = 0 : i64, tpu.core_type = #tpu.core_type<tc>, window_params = [{transform_indices = @transform_0, window_bounds = array<i64: 320, 64>}, {pipeline_mode = #tpu.pipeline_mode<synchronous>, transform_indices = @transform_1, window_bounds = array<i64: 64, 128>}, {pipeline_mode = #tpu.pipeline_mode<synchronous>, transform_indices = @transform_2, window_bounds = array<i64: 1, 128>}, {pipeline_mode = #tpu.pipeline_mode<synchronous>, transform_indices = @transform_3, window_bounds = array<i64: 128, 64>}, {pipeline_mode = #tpu.pipeline_mode<synchronous>, transform_indices = @transform_4, window_bounds = array<i64: 1, 64>}, {pipeline_mode = #tpu.pipeline_mode<synchronous>, transform_indices = @transform_5, window_bounds = array<i64: 64, 32>}, {pipeline_mode = #tpu.pipeline_mode<synchronous>, transform_indices = @transform_6, window_bounds = array<i64: 1, 32>}, {pipeline_mode = #tpu.pipeline_mode<synchronous>, transform_indices = @transform_7, window_bounds = array<i64: 1, 32>}, {pipeline_mode = #tpu.pipeline_mode<synchronous>, transform_indices = @transform_8, window_bounds = array<i64: 1, 1>}, {transform_indices = @transform_9, window_bounds = array<i64: 1, 320>}]} {
    %c0 = arith.constant 0 : index
    %c0_0 = arith.constant 0 : index
    %0 = vector.load %arg1[%c0, %c0_0] : memref<320x64xf32, #tpu.memory_space<vmem>>, vector<320x64xf32>
    %1 = arith.truncf %0 : vector<320x64xf32> to vector<320x64xbf16>
    %c0_1 = arith.constant 0 : index
    %c0_2 = arith.constant 0 : index
    %2 = vector.load %arg2[%c0_1, %c0_2] : memref<64x128xbf16, #tpu.memory_space<vmem>>, vector<64x128xbf16>
    %cst = arith.constant dense<0.000000e+00> : vector<320x128xf32>
    %3 = tpu.matmul %1, %2, %cst {dimension_numbers = #tpu.dot_dimension_numbers<[1], [0], [0], [1], [0, 0, 1, 1], [], []>} : vector<320x64xbf16>, vector<64x128xbf16>, vector<320x128xf32> -> vector<320x128xf32>
    %c0_3 = arith.constant 0 : index
    %c0_4 = arith.constant 0 : index
    %4 = vector.load %arg3[%c0_3, %c0_4] : memref<1x128xf32, #tpu.memory_space<vmem>>, vector<1x128xf32>
    %5 = vector.broadcast %4 : vector<1x128xf32> to vector<320x128xf32>
    %6 = arith.addf %3, %5 : vector<320x128xf32>
    %cst_5 = arith.constant 0.000000e+00 : f32
    %7 = vector.broadcast %cst_5 : f32 to vector<320x128xf32>
    %8 = arith.maximumf %6, %7 : vector<320x128xf32>
    %9 = arith.truncf %8 : vector<320x128xf32> to vector<320x128xbf16>
    %c0_6 = arith.constant 0 : index
    %c0_7 = arith.constant 0 : index
    %10 = vector.load %arg4[%c0_6, %c0_7] : memref<128x64xbf16, #tpu.memory_space<vmem>>, vector<128x64xbf16>
    %cst_8 = arith.constant dense<0.000000e+00> : vector<320x64xf32>
    %11 = tpu.matmul %9, %10, %cst_8 {dimension_numbers = #tpu.dot_dimension_numbers<[1], [0], [0], [1], [0, 0, 1, 1], [], []>} : vector<320x128xbf16>, vector<128x64xbf16>, vector<320x64xf32> -> vector<320x64xf32>
    %c0_9 = arith.constant 0 : index
    %c0_10 = arith.constant 0 : index
    %12 = vector.load %arg5[%c0_9, %c0_10] : memref<1x64xf32, #tpu.memory_space<vmem>>, vector<1x64xf32>
    %13 = vector.broadcast %12 : vector<1x64xf32> to vector<320x64xf32>
    %14 = arith.addf %11, %13 : vector<320x64xf32>
    %cst_11 = arith.constant 0.000000e+00 : f32
    %15 = vector.broadcast %cst_11 : f32 to vector<320x64xf32>
    %16 = arith.maximumf %14, %15 : vector<320x64xf32>
    %17 = arith.truncf %16 : vector<320x64xf32> to vector<320x64xbf16>
    %c0_12 = arith.constant 0 : index
    %c0_13 = arith.constant 0 : index
    %18 = vector.load %arg6[%c0_12, %c0_13] : memref<64x32xbf16, #tpu.memory_space<vmem>>, vector<64x32xbf16>
    %cst_14 = arith.constant dense<0.000000e+00> : vector<320x32xf32>
    %19 = tpu.matmul %17, %18, %cst_14 {dimension_numbers = #tpu.dot_dimension_numbers<[1], [0], [0], [1], [0, 0, 1, 1], [], []>} : vector<320x64xbf16>, vector<64x32xbf16>, vector<320x32xf32> -> vector<320x32xf32>
    %c0_15 = arith.constant 0 : index
    %c0_16 = arith.constant 0 : index
    %20 = vector.load %arg7[%c0_15, %c0_16] : memref<1x32xf32, #tpu.memory_space<vmem>>, vector<1x32xf32>
    %21 = vector.broadcast %20 : vector<1x32xf32> to vector<320x32xf32>
    %22 = arith.addf %19, %21 : vector<320x32xf32>
    %cst_17 = arith.constant 0.000000e+00 : f32
    %23 = vector.broadcast %cst_17 : f32 to vector<320x32xf32>
    %24 = arith.maximumf %22, %23 : vector<320x32xf32>
    %c0_18 = arith.constant 0 : index
    %c0_19 = arith.constant 0 : index
    %25 = vector.load %arg8[%c0_18, %c0_19] : memref<1x32xf32, #tpu.memory_space<vmem>>, vector<1x32xf32>
    %26 = vector.broadcast %25 : vector<1x32xf32> to vector<320x32xf32>
    %27 = arith.mulf %24, %26 : vector<320x32xf32>
    %cst_20 = arith.constant dense<0.000000e+00> : vector<320xf32>
    %28 = vector.multi_reduction <add>, %27, %cst_20 [1] : vector<320x32xf32> to vector<320xf32>
    %29 = vector.shape_cast %28 : vector<320xf32> to vector<1x320xf32>
    %c0_21 = arith.constant 0 : index
    %c0_22 = arith.constant 0 : index
    %30 = vector.load %arg9[%c0_21, %c0_22] : memref<1x1xf32, #tpu.memory_space<vmem>>, vector<1x1xf32>
    %31 = vector.broadcast %30 : vector<1x1xf32> to vector<1x320xf32>
    %32 = arith.addf %29, %31 : vector<1x320xf32>
    %c0_23 = arith.constant 0 : index
    %c0_24 = arith.constant 0 : index
    %33 = vector.load %arg10[%c0_23, %c0_24] : memref<1x320xf32, #tpu.memory_space<vmem>>, vector<1x320xf32>
    tpu.vector_store %arg10[%c0_23, %c0_24], %32 {strides = array<i32>} : memref<1x320xf32, #tpu.memory_space<vmem>>, vector<1x320xf32>,
    return
  }
  func.func @transform_0(%arg0: i32) -> (i32, i32) {
    %c0_i32 = arith.constant 0 : i32
    %c0_i32_0 = arith.constant 0 : i32
    return %arg0, %c0_i32 : i32, i32
  }
  func.func @transform_1(%arg0: i32) -> (i32, i32) {
    %c0_i32 = arith.constant 0 : i32
    %c0_i32_0 = arith.constant 0 : i32
    %c0_i32_1 = arith.constant 0 : i32
    return %c0_i32, %c0_i32_0 : i32, i32
  }
  func.func @transform_2(%arg0: i32) -> (i32, i32) {
    %c0_i32 = arith.constant 0 : i32
    %c0_i32_0 = arith.constant 0 : i32
    %c0_i32_1 = arith.constant 0 : i32
    return %c0_i32, %c0_i32_0 : i32, i32
  }
  func.func @transform_3(%arg0: i32) -> (i32, i32) {
    %c0_i32 = arith.constant 0 : i32
    %c0_i32_0 = arith.constant 0 : i32
    %c0_i32_1 = arith.constant 0 : i32
    return %c0_i32, %c0_i32_0 : i32, i32
  }
  func.func @transform_4(%arg0: i32) -> (i32, i32) {
    %c0_i32 = arith.constant 0 : i32
    %c0_i32_0 = arith.constant 0 : i32
    %c0_i32_1 = arith.constant 0 : i32
    return %c0_i32, %c0_i32_0 : i32, i32
  }
  func.func @transform_5(%arg0: i32) -> (i32, i32) {
    %c0_i32 = arith.constant 0 : i32
    %c0_i32_0 = arith.constant 0 : i32
    %c0_i32_1 = arith.constant 0 : i32
    return %c0_i32, %c0_i32_0 : i32, i32
  }
  func.func @transform_6(%arg0: i32) -> (i32, i32) {
    %c0_i32 = arith.constant 0 : i32
    %c0_i32_0 = arith.constant 0 : i32
    %c0_i32_1 = arith.constant 0 : i32
    return %c0_i32, %c0_i32_0 : i32, i32
  }
  func.func @transform_7(%arg0: i32) -> (i32, i32) {
    %c0_i32 = arith.constant 0 : i32
    %c0_i32_0 = arith.constant 0 : i32
    %c0_i32_1 = arith.constant 0 : i32
    return %c0_i32, %c0_i32_0 : i32, i32
  }
  func.func @transform_8(%arg0: i32) -> (i32, i32) {
    %c0_i32 = arith.constant 0 : i32
    %c0_i32_0 = arith.constant 0 : i32
    %c0_i32_1 = arith.constant 0 : i32
    return %c0_i32, %c0_i32_0 : i32, i32
  }
  func.func @transform_9(%arg0: i32) -> (i32, i32) {
    %c0_i32 = arith.constant 0 : i32
    %c0_i32_0 = arith.constant 0 : i32
    return %c0_i32, %arg0 : i32, i32
  }
}

</mosaic_0001>

<bundles_post_ra>
// kernel: tpu_custom_call.1
= control target key start
LH: loop header
LB: loop body
LE: loop exit
PB: predicated region body
PF: predicated region fallthrough
CT: control target
= control target key end

     0   :  { %s6998_s0 = inlined_call_operand.vmem [shape: f32[320,64], index: 0, kind: input, shape index: {}]   ;;  %s6999_s1 = inlined_call_operand.vmem [shape: bf16[64,128], index: 1, kind: input, shape index: {}]   ;;  %s7000_s2 = inlined_call_operand.vmem [shape: f32[1,128], index: 2, kind: input, shape index: {}]   ;;  %s7001_s3 = inlined_call_operand.vmem [shape: bf16[128,64], index: 3, kind: input, shape index: {}]   ;;  %s7002_s4 = inlined_call_operand.vmem [shape: f32[1,64], index: 4, kind: input, shape index: {}]   ;;  %s7003_s5 = inlined_call_operand.vmem [shape: bf16[64,32], index: 5, kind: input, shape index: {}]   ;;  %s7004_s6 = inlined_call_operand.vmem [shape: f32[1,32], index: 6, kind: input, shape index: {}]   ;;  %s7005_s7 = inlined_call_operand.vmem [shape: f32[1,32], index: 7, kind: input, shape index: {}]   ;;  %s7006_s8 = inlined_call_operand.<no memory space> [shape: f32[1,1], index: 8, kind: input, shape index: {}]   ;;  %s7007_s9 = inlined_call_operand.hbm [shape: f32[1,320], index: 9, kind: output, shape index: {}]  }
   0x1   :  { %v14_v0 = vstv %s7006_s8 }
   0x2   :  { %15 = vst [vmem:[#allocation2] sm:$0x1] %v14_v0 }
   0x3   :  { %v5296_v1 = vld [vmem:[%s6999_s1] sm:$0xff]   ;;  %v5297_v2 = vld [vmem:[%s6999_s1 + $0x8] sm:$0xff]   ;;  %v5298_v3 = vld [vmem:[%s6999_s1 + $0x10] sm:$0xff]   ;;  %vm135_vm0 = vcmask 523264  }
   0x4   :  { %5131 = vmatprep.subr.bf16.mxu0 %v5296_v1  ;;  %5283 = vmatprep.subr.bf16.mxu1 %v5296_v1  ;;  %v36_v4 = vld [vmem:[%s6998_s0] sm:$0xff]  ;;  %v37_v5 = vld [vmem:[%s6998_s0 + $0x8] sm:$0xff]  ;;  %v5299_v7 = vld [vmem:[%s6999_s1 + $0x18] sm:$0xff]  }
   0x5   :  { %5132 = vmatpush3.bf16.msra.mxu0 %v5296_v1  ;;  %5287 = vmatpush3.bf16.msra.mxu1 %v5296_v1  ;;  %v76_v6 = vpack.c.bf16 %v37_v5, %v36_v4  ;;  %v38_v8 = vld [vmem:[%s6998_s0 + $0x10] sm:$0xff]  ;;  %v56_v9 = vld [vmem:[%s6998_s0 + $0xa0] sm:$0xff]  ;;  %v39_v10 = vld [vmem:[%s6998_s0 + $0x18] sm:$0xff] }
   0x6   :  { %5133 = vmatprep.subr.bf16.mxu0 %v5297_v2  ;;  %5284 = vmatprep.subr.bf16.mxu1 %v5297_v2  ;;  %v40_v11 = vld [vmem:[%s6998_s0 + $0x20] sm:$0xff]  ;;  %v57_v12 = vld [vmem:[%s6998_s0 + $0xa8] sm:$0xff]  ;;  %v58_v15 = vld [vmem:[%s6998_s0 + $0xb0] sm:$0xff]  ;;  %v77_v19 = vpack.c.bf16 %v39_v10, %v38_v8 }
   0x7   :  { %5139 = vmatprep.mubr.msk.bf16.mxu0 %vm135_vm0, %v76_v6  ;;  %v41_v13 = vld [vmem:[%s6998_s0 + $0x28] sm:$0xff]  ;;  %v86_v14 = vpack.c.bf16 %v57_v12, %v56_v9  ;;  %v59_v16 = vld [vmem:[%s6998_s0 + $0xb8] sm:$0xff]  ;;  %v60_v17 = vld [vmem:[%s6998_s0 + $0xc0] sm:$0xff] }
   0x8   :  { %v61_v18 = vld [vmem:[%s6998_s0 + $0xc8] sm:$0xff]  ;;  %v78_v20 = vpack.c.bf16 %v41_v13, %v40_v11  ;;  %v87_v21 = vpack.c.bf16 %v59_v16, %v58_v15  ;;  %v42_v23 = vld [vmem:[%s6998_s0 + $0x30] sm:$0xff]  ;;  %v43_v24 = vld [vmem:[%s6998_s0 + $0x38] sm:$0xff] }
   0x9   :  { %5134 = vmatpush3.bf16.msra.mxu0 %v5297_v2  ;;  %5288 = vmatpush3.bf16.msra.mxu1 %v5297_v2  ;;  %v88_v22 = vpack.c.bf16 %v61_v18, %v60_v17  ;;  %v44_v25 = vld [vmem:[%s6998_s0 + $0x40] sm:$0xff]  ;;  %v45_v26 = vld [vmem:[%s6998_s0 + $0x48] sm:$0xff]  ;;  %v62_v27 = vld [vmem:[%s6998_s0 + $0xd0] sm:$0xff]  ;;  %v79_v33 = vpack.c.bf16 %v43_v24, %v42_v23 }
   0xa   :  { %5135 = vmatprep.subr.bf16.mxu0 %v5298_v3  ;;  %5285 = vmatprep.subr.bf16.mxu1 %v5298_v3  ;;  %v63_v28 = vld [vmem:[%s6998_s0 + $0xd8] sm:$0xff]  ;;  %v5300_v29 = vld [vmem:[%s7001_s3] sm:$0xff]   ;;  %v5301_v30 = vld [vmem:[%s7001_s3 + $0x8] sm:$0xff]   ;;  %v80_v35 = vpack.c.bf16 %v45_v26, %v44_v25 }
   0xb   :  { %5159 = vmatprep.mubr.msk.bf16.mxu1 %vm135_vm0, %v86_v14  ;;  %v64_v31 = vld [vmem:[%s6998_s0 + $0xe0] sm:$0xff]  ;;  %v65_v32 = vld [vmem:[%s6998_s0 + $0xe8] sm:$0xff]  ;;  %v5302_v34 = vld [vmem:[%s7001_s3 + $0x10] sm:$0xff]   ;;  %v89_v36 = vpack.c.bf16 %v63_v28, %v62_v27 }
   0xc   :  { %v90_v37 = vpack.c.bf16 %v65_v32, %v64_v31  ;;  %v5303_v38 = vld [vmem:[%s7001_s3 + $0x18] sm:$0xff]   ;;  %v46_v39 = vld [vmem:[%s6998_s0 + $0x50] sm:$0xff]  ;;  %v48_v41 = vld [vmem:[%s6998_s0 + $0x60] sm:$0xff] }
   0xd   :  { %5136 = vmatpush3.bf16.msra.mxu0 %v5298_v3  ;;  %5289 = vmatpush3.bf16.msra.mxu1 %v5298_v3  ;;  %v47_v40 = vld [vmem:[%s6998_s0 + $0x58] sm:$0xff] }
   0xe   :  { %5137 = vmatprep.subr.bf16.mxu0 %v5299_v7  ;;  %5286 = vmatprep.subr.bf16.mxu1 %v5299_v7 }
  0x11   :  { %5138 = vmatpush3.bf16.msra.mxu0 %v5299_v7  ;;  %5290 = vmatpush3.bf16.msra.mxu1 %v5299_v7 }
  0x12   :  { %5179 = vmatprep.subr.bf16.mxu1 %v5300_v29 }
  0x14   :  { %5140 = vmatmul.mubr.msk.bf16.vlgmr.msra.gmra.mrb[0].mxu0 %vm135_vm0, %v77_v19  ;;  %5160 = vmatmul.mubr.msk.bf16.vlgmr.msra.gmra.mrb[0].mxu1 %vm135_vm0, %v87_v21 }
  0x15   :  { %5143 = vmatprep.mubr.msk.bf16.mxu0 %vm135_vm0, %v78_v20  ;;  %5163 = vmatprep.mubr.msk.bf16.mxu1 %vm135_vm0, %v88_v22 }
  0x16   :  { %5180 = vmatpush3.bf16.msra.mxu1 %v5300_v29 }
  0x17   :  { %5181 = vmatprep.subr.bf16.mxu1 %v5301_v30 }
  0x1a   :  { %5182 = vmatpush3.bf16.msra.mxu1 %v5301_v30 }
  0x1b   :  { %5183 = vmatprep.subr.bf16.mxu1 %v5302_v34 }
  0x1c   :  { %5144 = vmatmul.mubr.msk.bf16.gmra.mrb[4].mxu0 %vm135_vm0, %v79_v33  ;;  %5164 = vmatmul.mubr.msk.bf16.gmra.mrb[4].mxu1 %vm135_vm0, %v89_v36 }
  0x1d   :  { %5147 = vmatprep.mubr.msk.bf16.mxu0 %vm135_vm0, %v80_v35 }
  0x1e   :  { %16 = vsyncpa [#allocation4], 0  ;;  %v49_v42 = vld [vmem:[%s6998_s0 + $0x68] sm:$0xff]  ;;  %5167 = vmatprep.mubr.msk.bf16.mxu1 %vm135_vm0, %v90_v37  ;;  %v66_v43 = vld [vmem:[%s6998_s0 + $0xf0] sm:$0xff]  ;;  %5184 = vmatpush3.bf16.msra.mxu1 %v5302_v34  ;;  %v81_v47 = vpack.c.bf16 %v47_v40, %v46_v39  ;;  %vm1152_vm1 = vcmask 261120   ;;  %vm4734_vm2 = vcmask 130112  }
  0x1f   :  { %v67_v44 = vld [vmem:[%s6998_s0 + $0xf8] sm:$0xff]  ;;  %v68_v45 = vld [vmem:[%s6998_s0 + $0x100] sm:$0xff]  ;;  %v69_v46 = vld [vmem:[%s6998_s0 + $0x108] sm:$0xff]  ;;  %5185 = vmatprep.subr.bf16.mxu1 %v5303_v38  ;;  %v82_v49 = vpack.c.bf16 %v49_v42, %v48_v41  ;;  %vm4741_vm3 = vcmask 195712   ;;  %vm4748_vm4 = vcmask 261312   ;;  %vm4755_vm5 = vcmask 326912  }
  0x20   :  { %v5304_v48 = vld [vmem:[%s7001_s3 + $0x20] sm:$0xff]   ;;  %v91_v50 = vpack.c.bf16 %v67_v44, %v66_v43  ;;  %v92_v51 = vpack.c.bf16 %v69_v46, %v68_v45  ;;  %v5305_v52 = vld [vmem:[%s7001_s3 + $0x28] sm:$0xff]   ;;  %v50_v53 = vld [vmem:[%s6998_s0 + $0x70] sm:$0xff]  ;;  %vm4762_vm6 = vcmask 392512   ;;  %vm4769_vm7 = vcmask 458112  }
  0x21   :  { %v51_v54 = vld [vmem:[%s6998_s0 + $0x78] sm:$0xff]  ;;  %v52_v55 = vld [vmem:[%s6998_s0 + $0x80] sm:$0xff]  ;;  %v53_v56 = vld [vmem:[%s6998_s0 + $0x88] sm:$0xff]  ;;  %vm4776_vm8 = vcmask 523712   ;;  %vm4783_vm9 = vcmask 589312   ;;  %vm4790_vm10 = vcmask 654912  }
  0x22   :  { %5186 = vmatpush3.bf16.msra.mxu1 %v5303_v38  ;;  %v70_v57 = vld [vmem:[%s6998_s0 + $0x110] sm:$0xff]  ;;  %v71_v58 = vld [vmem:[%s6998_s0 + $0x118] sm:$0xff]  ;;  %v72_v59 = vld [vmem:[%s6998_s0 + $0x120] sm:$0xff]  ;;  %v83_v61 = vpack.c.bf16 %v51_v54, %v50_v53  ;;  %v84_v62 = vpack.c.bf16 %v53_v56, %v52_v55  ;;  %vm4797_vm11 = vcmask 720512   ;;  %vm4804_vm12 = vcmask 786112  }
  0x23   :  { %5187 = vmatprep.subr.bf16.mxu1 %v5304_v48  ;;  %v73_v60 = vld [vmem:[%s6998_s0 + $0x128] sm:$0xff]  ;;  %v93_v63 = vpack.c.bf16 %v71_v58, %v70_v57  ;;  %v54_v1 = vld [vmem:[%s6998_s0 + $0x90] sm:$0xff]  ;;  %v55_v2 = vld [vmem:[%s6998_s0 + $0x98] sm:$0xff]  ;;  %vm4811_vm13 = vcmask 851712   ;;  %vm4818_vm14 = vcmask 917312   ;;  %vm4825_vm15 = vcmask 982912  }
  0x24   :  { %5148 = vmatmul.mubr.msk.bf16.gmra.mrb[8].mxu0 %vm135_vm0, %v81_v47  ;;  %5168 = vmatmul.mubr.msk.bf16.gmra.mrb[8].mxu1 %vm135_vm0, %v91_v50  ;;  %v94_v0 = vpack.c.bf16 %v73_v60, %v72_v59  ;;  %v74_v3 = vld [vmem:[%s6998_s0 + $0x130] sm:$0xff]  ;;  %v75_v4 = vld [vmem:[%s6998_s0 + $0x138] sm:$0xff]  ;;  %v85_v5 = vpack.c.bf16 %v55_v2, %v54_v1  ;;  %v5308_v9 = vld [vmem:[%s7003_s5] sm:$0xff]  }
  0x25   :  { %5151 = vmatprep.mubr.msk.bf16.mxu0 %vm135_vm0, %v82_v49  ;;  %5171 = vmatprep.mubr.msk.bf16.mxu1 %vm135_vm0, %v92_v51  ;;  %v95_v6 = vpack.c.bf16 %v75_v4, %v74_v3  ;;  %v5306_v7 = vld [vmem:[%s7001_s3 + $0x30] sm:$0xff]   ;;  %v5307_v8 = vld [vmem:[%s7001_s3 + $0x38] sm:$0xff]   ;;  %v5309_v10 = vld [vmem:[%s7003_s5 + $0x8] sm:$0xff]  }
  0x26   :  { %5188 = vmatpush3.bf16.msra.mxu1 %v5304_v48  ;;  %5235 = vmatprep.subr.bf16.mxu0 %v5308_v9  ;;  %v5310_v11 = vld [vmem:[%s7003_s5 + $0x10] sm:$0xff]   ;;  %v5580_v12 = vld [vmem:[%s7000_s2] ss:$0 sm:$0xff] }
  0x27   :  { %5189 = vmatprep.subr.bf16.mxu1 %v5305_v52  ;;  %5236 = vmatpush3.bf16.msra.mxu0 %v5308_v9 }
  0x28   :  { %5237 = vmatprep.subr.bf16.mxu0 %v5309_v10 }
  0x2a   :  { %5190 = vmatpush3.bf16.msra.mxu1 %v5305_v52 }
  0x2b   :  { %5191 = vmatprep.subr.bf16.mxu1 %v5306_v7  ;;  %5238 = vmatpush3.bf16.msra.mxu0 %v5309_v10 }
  0x2c   :  { %5152 = vmatmul.mubr.msk.bf16.gmra.mrb[12].mxu0 %vm135_vm0, %v83_v61  ;;  %5172 = vmatmul.mubr.msk.bf16.gmra.mrb[12].mxu1 %vm135_vm0, %v93_v63 }
  0x2d   :  { %5155 = vmatprep.mubr.msk.bf16.mxu0 %vm135_vm0, %v84_v62  ;;  %5175 = vmatprep.mubr.msk.bf16.mxu1 %vm135_vm0, %v94_v0 }
  0x2e   :  { %5192 = vmatpush3.bf16.msra.mxu1 %v5306_v7  ;;  %5239 = vmatprep.subr.bf16.mxu0 %v5310_v11 }
  0x2f   :  { %5193 = vmatprep.subr.bf16.mxu1 %v5307_v8  ;;  %5240 = vmatpush3.bf16.msra.mxu0 %v5310_v11 }
  0x32   :  { %5194 = vmatpush3.bf16.msra.mxu1 %v5307_v8 }
  0x34   :  { %5156 = vmatmul.mubr.msk.bf16.gmra.mrb[16].mxu0 %vm135_vm0, %v85_v5  ;;  %5176 = vmatmul.mubr.msk.bf16.gmra.mrb[16].mxu1 %vm135_vm0, %v95_v6 }
  0xe7   :  { %v5141_v13 = vpop.f32.mrb[0].mxu0  ;;  %v5161_v16 = vpop.f32.mrb[0].mxu1 }
  0xe8   :  { %v239_v14 = vadd.f32 %v5141_v13, %v5580_v12  ;;  %v230_v15 = vpop.f32.mrb[1].mxu0  ;;  %v319_v19 = vadd.f32 %v5161_v16, %v5580_v12  ;;  %v310_v20 = vpop.f32.mrb[1].mxu1 }
  0xe9   :  { %v231_v17 = vadd.f32 %v5580_v12, %v230_v15  ;;  %v5142_v18 = vpop.f32.mrb[2].mxu0  ;;  %v311_v23 = vadd.f32 %v5580_v12, %v310_v20  ;;  %v5162_v24 = vpop.f32.mrb[2].mxu1 }
  0xea   :  { %v242_v21 = vadd.f32 %v5142_v18, %v5580_v12  ;;  %v233_v22 = vpop.f32.mrb[3].mxu0  ;;  %v411_v26 = vmax.f32 %v319_v19, 0.0  ;;  %v322_v27 = vadd.f32 %v5162_v24, %v5580_v12  ;;  %v313_v28 = vpop.f32.mrb[3].mxu1  ;;  %v391_v29 = vmax.f32 %v239_v14, 0.0 }
  0xeb   :  { %v234_v25 = vadd.f32 %v5580_v12, %v233_v22  ;;  %v409_v31 = vmax.f32 %v311_v23, 0.0  ;;  %v314_v32 = vadd.f32 %v5580_v12, %v313_v28  ;;  %v389_v33 = vmax.f32 %v231_v17, 0.0 }
  0xec   :  { %v392_v30 = vmax.f32 %v242_v21, 0.0  ;;  %v412_v35 = vmax.f32 %v322_v27, 0.0 }
  0xed   :  { %v390_v34 = vmax.f32 %v234_v25, 0.0  ;;  %v410_v37 = vmax.f32 %v314_v32, 0.0 }
  0xee   :  { %v430_v36 = vpack.c.bf16 %v392_v30, %v391_v29  ;;  %v5590_v40 = vpack.c.bf16 %v412_v35, %v411_v26 }
  0xef   :  { %v429_v38 = vpack.c.bf16 %v390_v34, %v389_v33  ;;  %v5145_v39 = vpop.f32.mrb[4].mxu0  ;;  %v5593_v43 = vpack.c.bf16 %v410_v37, %v409_v31  ;;  %v5165_v44 = vpop.f32.mrb[4].mxu1 }
  0xf0   :  { %v255_v41 = vadd.f32 %v5145_v39, %v5580_v12  ;;  %v246_v42 = vpop.f32.mrb[5].mxu0  ;;  %v335_v47 = vadd.f32 %v5165_v44, %v5580_v12  ;;  %v326_v48 = vpop.f32.mrb[5].mxu1 }
  0xf1   :  { %v247_v45 = vadd.f32 %v5580_v12, %v246_v42  ;;  %v5146_v46 = vpop.f32.mrb[6].mxu0  ;;  %5195 = vmatprep.mubr.bf16.mxu1 %v429_v38  ;;  %v327_v52 = vadd.f32 %v5580_v12, %v326_v48  ;;  %v5166_v53 = vpop.f32.mrb[6].mxu1 }
  0xf2   :  { %v395_v49 = vmax.f32 %v255_v41, 0.0  ;;  %v258_v50 = vadd.f32 %v5146_v46, %v5580_v12  ;;  %v249_v51 = vpop.f32.mrb[7].mxu0  ;;  %5196 = vmatmul.mubr.bf16.vlgmr.msra.gmra.mrb[20].mxu1 %v430_v36  ;;  %v415_v56 = vmax.f32 %v335_v47, 0.0  ;;  %v338_v57 = vadd.f32 %v5166_v53, %v5580_v12  ;;  %v329_v58 = vpop.f32.mrb[7].mxu1 }
  0xf3   :  { %v393_v54 = vmax.f32 %v247_v45, 0.0  ;;  %v250_v55 = vadd.f32 %v5580_v12, %v249_v51  ;;  %v413_v60 = vmax.f32 %v327_v52, 0.0  ;;  %v330_v61 = vadd.f32 %v5580_v12, %v329_v58 }
  0xf4   :  { %v396_v59 = vmax.f32 %v258_v50, 0.0  ;;  %v416_v63 = vmax.f32 %v338_v57, 0.0 }
  0xf5   :  { %v394_v62 = vmax.f32 %v250_v55, 0.0  ;;  %v414_v1 = vmax.f32 %v330_v61, 0.0 }
  0xf6   :  { %v432_v0 = vpack.c.bf16 %v396_v59, %v395_v49  ;;  %v5602_v4 = vpack.c.bf16 %v416_v63, %v415_v56 }
  0xf7   :  { %v431_v2 = vpack.c.bf16 %v394_v62, %v393_v54  ;;  %v5149_v3 = vpop.f32.mrb[8].mxu0  ;;  %v5605_v7 = vpack.c.bf16 %v414_v1, %v413_v60  ;;  %v5169_v8 = vpop.f32.mrb[8].mxu1 }
  0xf8   :  { %v271_v5 = vadd.f32 %v5149_v3, %v5580_v12  ;;  %v262_v6 = vpop.f32.mrb[9].mxu0  ;;  %v351_v11 = vadd.f32 %v5169_v8, %v5580_v12  ;;  %v342_v13 = vpop.f32.mrb[9].mxu1 }
  0xf9   :  { %v263_v9 = vadd.f32 %v5580_v12, %v262_v6  ;;  %v5150_v10 = vpop.f32.mrb[10].mxu0  ;;  %5199 = vmatprep.mubr.bf16.mxu1 %v431_v2  ;;  %v343_v17 = vadd.f32 %v5580_v12, %v342_v13  ;;  %v5170_v18 = vpop.f32.mrb[10].mxu1 }
  0xfa   :  { %v399_v14 = vmax.f32 %v271_v5, 0.0  ;;  %v274_v15 = vadd.f32 %v5150_v10, %v5580_v12  ;;  %v265_v16 = vpop.f32.mrb[11].mxu0  ;;  %5200 = vmatmul.mubr.bf16.gmra.mrb[24].mxu1 %v432_v0  ;;  %v419_v21 = vmax.f32 %v351_v11, 0.0  ;;  %v354_v22 = vadd.f32 %v5170_v18, %v5580_v12  ;;  %v345_v23 = vpop.f32.mrb[11].mxu1 }
  0xfb   :  { %v397_v19 = vmax.f32 %v263_v9, 0.0  ;;  %v266_v20 = vadd.f32 %v5580_v12, %v265_v16  ;;  %v417_v25 = vmax.f32 %v343_v17, 0.0  ;;  %v346_v26 = vadd.f32 %v5580_v12, %v345_v23 }
  0xfc   :  { %v400_v24 = vmax.f32 %v274_v15, 0.0  ;;  %v420_v28 = vmax.f32 %v354_v22, 0.0 }
  0xfd   :  { %v398_v27 = vmax.f32 %v266_v20, 0.0  ;;  %v418_v30 = vmax.f32 %v346_v26, 0.0 }
  0xfe   :  { %v434_v29 = vpack.c.bf16 %v400_v24, %v399_v14  ;;  %v5614_v33 = vpack.c.bf16 %v420_v28, %v419_v21 }
  0xff   :  { %v433_v31 = vpack.c.bf16 %v398_v27, %v397_v19  ;;  %v5153_v32 = vpop.f32.mrb[12].mxu0  ;;  %v5617_v36 = vpack.c.bf16 %v418_v30, %v417_v25  ;;  %v5173_v37 = vpop.f32.mrb[12].mxu1 }
 0x100   :  { %v287_v34 = vadd.f32 %v5153_v32, %v5580_v12  ;;  %v278_v35 = vpop.f32.mrb[13].mxu0  ;;  %v367_v41 = vadd.f32 %v5173_v37, %v5580_v12  ;;  %v358_v42 = vpop.f32.mrb[13].mxu1 }
 0x101   :  { %v279_v38 = vadd.f32 %v5580_v12, %v278_v35  ;;  %v5154_v39 = vpop.f32.mrb[14].mxu0  ;;  %5203 = vmatprep.mubr.bf16.mxu1 %v433_v31  ;;  %v359_v47 = vadd.f32 %v5580_v12, %v358_v42  ;;  %v5174_v48 = vpop.f32.mrb[14].mxu1 }
 0x102   :  { %v403_v44 = vmax.f32 %v287_v34, 0.0  ;;  %v290_v45 = vadd.f32 %v5154_v39, %v5580_v12  ;;  %v281_v46 = vpop.f32.mrb[15].mxu0  ;;  %5204 = vmatmul.mubr.bf16.gmra.mrb[28].mxu1 %v434_v29  ;;  %v423_v51 = vmax.f32 %v367_v41, 0.0  ;;  %v370_v52 = vadd.f32 %v5174_v48, %v5580_v12  ;;  %v361_v53 = vpop.f32.mrb[15].mxu1 }
 0x103   :  { %v401_v49 = vmax.f32 %v279_v38, 0.0  ;;  %v282_v50 = vadd.f32 %v5580_v12, %v281_v46  ;;  %v421_v55 = vmax.f32 %v359_v47, 0.0  ;;  %v362_v56 = vadd.f32 %v5580_v12, %v361_v53 }
 0x104   :  { %v404_v54 = vmax.f32 %v290_v45, 0.0  ;;  %v424_v58 = vmax.f32 %v370_v52, 0.0 }
 0x105   :  { %v402_v57 = vmax.f32 %v282_v50, 0.0  ;;  %v422_v60 = vmax.f32 %v362_v56, 0.0 }
 0x106   :  { %v436_v59 = vpack.c.bf16 %v404_v54, %v403_v44  ;;  %v446_v63 = vpack.c.bf16 %v424_v58, %v423_v51 }
 0x107   :  { %v435_v61 = vpack.c.bf16 %v402_v57, %v401_v49  ;;  %v5157_v62 = vpop.f32.mrb[16].mxu0  ;;  %v445_v2 = vpack.c.bf16 %v422_v60, %v421_v55  ;;  %v5177_v3 = vpop.f32.mrb[16].mxu1 }
 0x108   :  { %v303_v0 = vadd.f32 %v5157_v62, %v5580_v12  ;;  %v294_v1 = vpop.f32.mrb[17].mxu0  ;;  %v383_v8 = vadd.f32 %v5177_v3, %v5580_v12  ;;  %v374_v9 = vpop.f32.mrb[17].mxu1 }
 0x109   :  { %v295_v5 = vadd.f32 %v5580_v12, %v294_v1  ;;  %v5158_v6 = vpop.f32.mrb[18].mxu0  ;;  %5207 = vmatprep.mubr.bf16.mxu1 %v435_v61  ;;  %v375_v14 = vadd.f32 %v5580_v12, %v374_v9  ;;  %v5178_v15 = vpop.f32.mrb[18].mxu1 }
 0x10a   :  { %v407_v10 = vmax.f32 %v303_v0, 0.0  ;;  %v306_v11 = vadd.f32 %v5158_v6, %v5580_v12  ;;  %v297_v13 = vpop.f32.mrb[19].mxu0  ;;  %5208 = vmatmul.mubr.bf16.gmra.mrb[32].mxu1 %v436_v59  ;;  %v427_v18 = vmax.f32 %v383_v8, 0.0  ;;  %v386_v19 = vadd.f32 %v5178_v15, %v5580_v12  ;;  %v377_v20 = vpop.f32.mrb[19].mxu1 }
 0x10b   :  { %v405_v16 = vmax.f32 %v295_v5, 0.0  ;;  %v298_v17 = vadd.f32 %v5580_v12, %v297_v13  ;;  %v425_v22 = vmax.f32 %v375_v14, 0.0  ;;  %v378_v23 = vadd.f32 %v5580_v12, %v377_v20  ;;  %v5311_v12 = vld [vmem:[%s7003_s5 + $0x18] sm:$0xff]  }
 0x10c   :  { %v408_v21 = vmax.f32 %v306_v11, 0.0  ;;  %v428_v25 = vmax.f32 %v386_v19, 0.0  ;;  %5241 = vmatprep.subr.bf16.mxu0 %v5311_v12 }
 0x10d   :  { %v406_v24 = vmax.f32 %v298_v17, 0.0  ;;  %v426_v27 = vmax.f32 %v378_v23, 0.0  ;;  %5242 = vmatpush3.bf16.msra.mxu0 %v5311_v12 }
 0x10e   :  { %v438_v26 = vpack.c.bf16 %v408_v21, %v407_v10  ;;  %v448_v29 = vpack.c.bf16 %v428_v25, %v427_v18 }
 0x10f   :  { %v437_v28 = vpack.c.bf16 %v406_v24, %v405_v16  ;;  %v447_v30 = vpack.c.bf16 %v426_v27, %v425_v22 }
 0x111   :  { %5211 = vmatprep.mubr.bf16.mxu1 %v437_v28 }
 0x112   :  { %5212 = vmatmul.mubr.bf16.gmra.mrb[36].mxu1 %v438_v26 }
 0x113   :  { %5215 = vmatprep.mubr.bf16.mxu1 %v5593_v43  ;;  %v1273_v43 = vld [vmem:[#allocation2] sm:$0x1] }
 0x11a   :  { %5216 = vmatmul.mubr.bf16.gmra.mrb[40].mxu1 %v5590_v40  ;;  %v5336_v40 = vmov 0  }
 0x11b   :  { %5219 = vmatprep.mubr.bf16.mxu1 %v5605_v7  ;;  %5294 = vset.pattern.permute.xlu0 %v5336_v40 }
 0x11c   :  { %5295 = vset.pattern.permute.xlu1 %v5336_v40  ;;  %1276 = vperm.xlu0 %5294, %v1273_v43  }
 0x122   :  { %5220 = vmatmul.mubr.bf16.gmra.mrb[44].mxu1 %v5602_v4  ;;  %v5646_v4 = vld [vmem:[%s7002_s4] ss:$0 sm:$0xff] }
 0x123   :  { %5223 = vmatprep.mubr.bf16.mxu1 %v5617_v36 }
 0x12a   :  { %5224 = vmatmul.mubr.bf16.gmra.mrb[48].mxu1 %v5614_v33 }
 0x12b   :  { %5227 = vmatprep.mubr.bf16.mxu1 %v445_v2 }
 0x132   :  { %5228 = vmatmul.mubr.bf16.gmra.mrb[52].mxu1 %v446_v63 }
 0x133   :  { %5231 = vmatprep.mubr.bf16.mxu1 %v447_v30 }
 0x13a   :  { %5232 = vmatmul.mubr.bf16.gmra.mrb[56].mxu1 %v448_v29 }
 0x1c5   :  { %v5197_v7 = vpop.f32.mrb[20].mxu1 }
 0x1c6   :  { %v563_v31 = vadd.f32 %v5197_v7, %v5646_v4  ;;  %v554_v32 = vpop.f32.mrb[21].mxu1 }
 0x1c7   :  { %v555_v33 = vadd.f32 %v5646_v4, %v554_v32  ;;  %v5198_v34 = vpop.f32.mrb[22].mxu1 }
 0x1c8   :  { %v566_v35 = vadd.f32 %v5198_v34, %v5646_v4  ;;  %v557_v36 = vpop.f32.mrb[23].mxu1  ;;  %v715_v38 = vmax.f32 %v563_v31, 0.0 }
 0x1c9   :  { %v558_v37 = vadd.f32 %v5646_v4, %v557_v36  ;;  %v713_v41 = vmax.f32 %v555_v33, 0.0 }
 0x1ca   :  { %v716_v39 = vmax.f32 %v566_v35, 0.0 }
 0x1cb   :  { %v714_v42 = vmax.f32 %v558_v37, 0.0 }
 0x1cc   :  { %v754_v44 = vpack.c.bf16 %v716_v39, %v715_v38 }
 0x1cd   :  { %v753_v45 = vpack.c.bf16 %v714_v42, %v713_v41  ;;  %v5201_v46 = vpop.f32.mrb[24].mxu1 }
 0x1ce   :  { %v579_v47 = vadd.f32 %v5201_v46, %v5646_v4  ;;  %v570_v48 = vpop.f32.mrb[25].mxu1 }
 0x1cf   :  { %v571_v49 = vadd.f32 %v5646_v4, %v570_v48  ;;  %v5202_v50 = vpop.f32.mrb[26].mxu1  ;;  %5243 = vmatprep.mubr.msk.bf16.mxu0 %vm135_vm0, %v753_v45 }
 0x1d0   :  { %v719_v51 = vmax.f32 %v579_v47, 0.0  ;;  %v582_v52 = vadd.f32 %v5202_v50, %v5646_v4  ;;  %v573_v53 = vpop.f32.mrb[27].mxu1  ;;  %5244 = vmatmul.mubr.msk.bf16.vlgmr.msra.gmra.mrb[20].mxu0 %vm135_vm0, %v754_v44 }
 0x1d1   :  { %v717_v54 = vmax.f32 %v571_v49, 0.0  ;;  %v574_v55 = vadd.f32 %v5646_v4, %v573_v53 }
 0x1d2   :  { %v720_v56 = vmax.f32 %v582_v52, 0.0 }
 0x1d3   :  { %v718_v57 = vmax.f32 %v574_v55, 0.0 }
 0x1d4   :  { %v756_v58 = vpack.c.bf16 %v720_v56, %v719_v51 }
 0x1d5   :  { %v755_v59 = vpack.c.bf16 %v718_v57, %v717_v54  ;;  %v5205_v60 = vpop.f32.mrb[28].mxu1 }
 0x1d6   :  { %v595_v61 = vadd.f32 %v5205_v60, %v5646_v4  ;;  %v586_v62 = vpop.f32.mrb[29].mxu1 }
 0x1d7   :  { %v587_v63 = vadd.f32 %v5646_v4, %v586_v62  ;;  %v5206_v0 = vpop.f32.mrb[30].mxu1  ;;  %5247 = vmatprep.mubr.msk.bf16.mxu0 %vm135_vm0, %v755_v59 }
 0x1d8   :  { %v723_v1 = vmax.f32 %v595_v61, 0.0  ;;  %v598_v2 = vadd.f32 %v5206_v0, %v5646_v4  ;;  %v589_v3 = vpop.f32.mrb[31].mxu1  ;;  %5248 = vmatmul.mubr.msk.bf16.gmra.mrb[24].mxu0 %vm135_vm0, %v756_v58 }
 0x1d9   :  { %v721_v5 = vmax.f32 %v587_v63, 0.0  ;;  %v590_v6 = vadd.f32 %v5646_v4, %v589_v3 }
 0x1da   :  { %v724_v8 = vmax.f32 %v598_v2, 0.0 }
 0x1db   :  { %v722_v9 = vmax.f32 %v590_v6, 0.0 }
 0x1dc   :  { %v758_v10 = vpack.c.bf16 %v724_v8, %v723_v1 }
 0x1dd   :  { %v757_v11 = vpack.c.bf16 %v722_v9, %v721_v5  ;;  %v5209_v13 = vpop.f32.mrb[32].mxu1 }
 0x1de   :  { %v611_v14 = vadd.f32 %v5209_v13, %v5646_v4  ;;  %v602_v15 = vpop.f32.mrb[33].mxu1 }
 0x1df   :  { %v603_v16 = vadd.f32 %v5646_v4, %v602_v15  ;;  %v5210_v17 = vpop.f32.mrb[34].mxu1  ;;  %5251 = vmatprep.mubr.msk.bf16.mxu0 %vm135_vm0, %v757_v11 }
 0x1e0   :  { %v727_v18 = vmax.f32 %v611_v14, 0.0  ;;  %v614_v19 = vadd.f32 %v5210_v17, %v5646_v4  ;;  %v605_v20 = vpop.f32.mrb[35].mxu1  ;;  %5252 = vmatmul.mubr.msk.bf16.gmra.mrb[28].mxu0 %vm135_vm0, %v758_v10 }
 0x1e1   :  { %v725_v21 = vmax.f32 %v603_v16, 0.0  ;;  %v606_v22 = vadd.f32 %v5646_v4, %v605_v20 }
 0x1e2   :  { %v728_v23 = vmax.f32 %v614_v19, 0.0 }
 0x1e3   :  { %v726_v24 = vmax.f32 %v606_v22, 0.0 }
 0x1e4   :  { %v760_v25 = vpack.c.bf16 %v728_v23, %v727_v18 }
 0x1e5   :  { %v759_v26 = vpack.c.bf16 %v726_v24, %v725_v21  ;;  %v5213_v27 = vpop.f32.mrb[36].mxu1 }
 0x1e6   :  { %v627_v28 = vadd.f32 %v5213_v27, %v5646_v4  ;;  %v618_v29 = vpop.f32.mrb[37].mxu1 }
 0x1e7   :  { %v619_v30 = vadd.f32 %v5646_v4, %v618_v29  ;;  %v5214_v12 = vpop.f32.mrb[38].mxu1  ;;  %5255 = vmatprep.mubr.msk.bf16.mxu0 %vm135_vm0, %v759_v26 }
 0x1e8   :  { %v731_v43 = vmax.f32 %v627_v28, 0.0  ;;  %v630_v40 = vadd.f32 %v5214_v12, %v5646_v4  ;;  %v621_v7 = vpop.f32.mrb[39].mxu1  ;;  %5256 = vmatmul.mubr.msk.bf16.gmra.mrb[32].mxu0 %vm135_vm0, %v760_v25 }
 0x1e9   :  { %v729_v31 = vmax.f32 %v619_v30, 0.0  ;;  %v622_v32 = vadd.f32 %v5646_v4, %v621_v7 }
 0x1ea   :  { %v732_v33 = vmax.f32 %v630_v40, 0.0 }
 0x1eb   :  { %v730_v34 = vmax.f32 %v622_v32, 0.0 }
 0x1ec   :  { %v762_v35 = vpack.c.bf16 %v732_v33, %v731_v43 }
 0x1ed   :  { %v761_v36 = vpack.c.bf16 %v730_v34, %v729_v31  ;;  %v5217_v37 = vpop.f32.mrb[40].mxu1 }
 0x1ee   :  { %v643_v38 = vadd.f32 %v5217_v37, %v5646_v4  ;;  %v634_v39 = vpop.f32.mrb[41].mxu1 }
 0x1ef   :  { %v635_v41 = vadd.f32 %v5646_v4, %v634_v39  ;;  %v5218_v42 = vpop.f32.mrb[42].mxu1  ;;  %5259 = vmatprep.mubr.msk.bf16.mxu0 %vm135_vm0, %v761_v36 }
 0x1f0   :  { %v735_v44 = vmax.f32 %v643_v38, 0.0  ;;  %v646_v45 = vadd.f32 %v5218_v42, %v5646_v4  ;;  %v637_v46 = vpop.f32.mrb[43].mxu1  ;;  %5260 = vmatmul.mubr.msk.bf16.gmra.mrb[36].mxu0 %vm135_vm0, %v762_v35 }
 0x1f1   :  { %v733_v47 = vmax.f32 %v635_v41, 0.0  ;;  %v638_v48 = vadd.f32 %v5646_v4, %v637_v46  ;;  %v5711_v46 = vld [vmem:[%s7004_s6] ss:$0 sm:$0xff]  ;;  %s5338_s6 = smov [#allocation3]  }
 0x1f2   :  { %v736_v49 = vmax.f32 %v646_v45, 0.0 }
 0x1f3   :  { %v734_v50 = vmax.f32 %v638_v48, 0.0 }
 0x1f4   :  { %v764_v51 = vpack.c.bf16 %v736_v49, %v735_v44 }
 0x1f5   :  { %v763_v52 = vpack.c.bf16 %v734_v50, %v733_v47  ;;  %v5221_v53 = vpop.f32.mrb[44].mxu1 }
 0x1f6   :  { %v659_v54 = vadd.f32 %v5221_v53, %v5646_v4  ;;  %v650_v55 = vpop.f32.mrb[45].mxu1 }
 0x1f7   :  { %v651_v56 = vadd.f32 %v5646_v4, %v650_v55  ;;  %v5222_v57 = vpop.f32.mrb[46].mxu1  ;;  %5263 = vmatprep.mubr.msk.bf16.mxu0 %vm135_vm0, %v763_v52 }
 0x1f8   :  { %v739_v58 = vmax.f32 %v659_v54, 0.0  ;;  %v662_v59 = vadd.f32 %v5222_v57, %v5646_v4  ;;  %v653_v60 = vpop.f32.mrb[47].mxu1  ;;  %5264 = vmatmul.mubr.msk.bf16.gmra.mrb[40].mxu0 %vm135_vm0, %v764_v51  ;;  %v5718_v51 = vld [vmem:[%s7005_s7] ss:$0 sm:$0xff]  ;;  %s4987_s7 = sshll.u32 %s5338_s6, 4  ;;  %s4988_s7 = int_to_ptr.vmem [resolvable:$true] %s4987_s7 }
 0x1f9   :  { %v737_v61 = vmax.f32 %v651_v56, 0.0  ;;  %v654_v62 = vadd.f32 %v5646_v4, %v653_v60  ;;  %s5312_s11 = scalar_lea.vmem %s4988_s7, 48  ;;  %s5316_s12 = scalar_lea.vmem %s4988_s7, 64 }
 0x1fa   :  { %v740_v63 = vmax.f32 %v662_v59, 0.0  ;;  %p5313_p0 = scmp.ne.s32.totalorder %s4988_s7, %s5312_s11  ;;  %p5317_p1 = scmp.lt.s32.totalorder %s4988_s7, %s4988_s7 }
 0x1fb   :  { %v738_v0 = vmax.f32 %v654_v62, 0.0  ;;  %p5318_p2 = scmp.lt.s32.totalorder %s5316_s12, %s5312_s11 }
 0x1fc   :  { %v766_v1 = vpack.c.bf16 %v740_v63, %v739_v58 }
 0x1fd   :  { %v765_v2 = vpack.c.bf16 %v738_v0, %v737_v61  ;;  %v5225_v3 = vpop.f32.mrb[48].mxu1  ;;  %p5319_p3 = por %p5318_p2, %p5317_p1 }
 0x1fe   :  { %v675_v5 = vadd.f32 %v5225_v3, %v5646_v4  ;;  %v666_v6 = vpop.f32.mrb[49].mxu1 }
 0x1ff   :  { %v667_v8 = vadd.f32 %v5646_v4, %v666_v6  ;;  %v5226_v9 = vpop.f32.mrb[50].mxu1  ;;  %5267 = vmatprep.mubr.msk.bf16.mxu0 %vm135_vm0, %v765_v2  ;;  %p5320_p4 = pnand %p5319_p3, %p5313_p0 }
 0x200   :  { %v743_v10 = vmax.f32 %v675_v5, 0.0  ;;  %v678_v11 = vadd.f32 %v5226_v9, %v5646_v4  ;;  %v669_v13 = vpop.f32.mrb[51].mxu1  ;;  %5268 = vmatmul.mubr.msk.bf16.gmra.mrb[44].mxu0 %vm135_vm0, %v766_v1 }
 0x201   :  { %v741_v14 = vmax.f32 %v667_v8, 0.0  ;;  %v670_v15 = vadd.f32 %v5646_v4, %v669_v13 }
 0x202   :  { %v744_v16 = vmax.f32 %v678_v11, 0.0 }
 0x203   :  { %v742_v17 = vmax.f32 %v670_v15, 0.0 }
 0x204   :  { %v768_v18 = vpack.c.bf16 %v744_v16, %v743_v10 }
 0x205   :  { %v767_v19 = vpack.c.bf16 %v742_v17, %v741_v14  ;;  %v5229_v20 = vpop.f32.mrb[52].mxu1 }
 0x206   :  { %v691_v21 = vadd.f32 %v5229_v20, %v5646_v4  ;;  %v682_v22 = vpop.f32.mrb[53].mxu1 }
 0x207   :  { %v683_v23 = vadd.f32 %v5646_v4, %v682_v22  ;;  %v5230_v24 = vpop.f32.mrb[54].mxu1  ;;  %5271 = vmatprep.mubr.msk.bf16.mxu0 %vm135_vm0, %v767_v19 }
 0x208   :  { %v747_v25 = vmax.f32 %v691_v21, 0.0  ;;  %v694_v26 = vadd.f32 %v5230_v24, %v5646_v4  ;;  %v685_v27 = vpop.f32.mrb[55].mxu1  ;;  %5272 = vmatmul.mubr.msk.bf16.gmra.mrb[48].mxu0 %vm135_vm0, %v768_v18 }
 0x209   :  { %v745_v28 = vmax.f32 %v683_v23, 0.0  ;;  %v686_v29 = vadd.f32 %v5646_v4, %v685_v27 }
 0x20a   :  { %v748_v30 = vmax.f32 %v694_v26, 0.0 }
 0x20b   :  { %v746_v12 = vmax.f32 %v686_v29, 0.0 }
 0x20c   :  { %v770_v43 = vpack.c.bf16 %v748_v30, %v747_v25 }
 0x20d   :  { %v769_v40 = vpack.c.bf16 %v746_v12, %v745_v28  ;;  %v5233_v7 = vpop.f32.mrb[56].mxu1 }
 0x20e   :  { %v707_v31 = vadd.f32 %v5233_v7, %v5646_v4  ;;  %v698_v32 = vpop.f32.mrb[57].mxu1 }
 0x20f   :  { %v699_v33 = vadd.f32 %v5646_v4, %v698_v32  ;;  %v5234_v34 = vpop.f32.mrb[58].mxu1  ;;  %5275 = vmatprep.mubr.msk.bf16.mxu0 %vm135_vm0, %v769_v40 }
 0x210   :  { %v751_v35 = vmax.f32 %v707_v31, 0.0  ;;  %v710_v36 = vadd.f32 %v5234_v34, %v5646_v4  ;;  %v701_v37 = vpop.f32.mrb[59].mxu1  ;;  %5276 = vmatmul.mubr.msk.bf16.gmra.mrb[52].mxu0 %vm135_vm0, %v770_v43 }
 0x211   :  { %v749_v38 = vmax.f32 %v699_v33, 0.0  ;;  %v702_v39 = vadd.f32 %v5646_v4, %v701_v37 }
 0x212   :  { %v752_v41 = vmax.f32 %v710_v36, 0.0 }
 0x213   :  { %v750_v42 = vmax.f32 %v702_v39, 0.0 }
 0x214   :  { %v772_v44 = vpack.c.bf16 %v752_v41, %v751_v35 }
 0x215   :  { %v771_v45 = vpack.c.bf16 %v750_v42, %v749_v38 }
 0x217   :  { %5279 = vmatprep.mubr.msk.bf16.mxu0 %vm135_vm0, %v771_v45 }
 0x218   :  { %5280 = vmatmul.mubr.msk.bf16.gmra.mrb[56].mxu0 %vm135_vm0, %v772_v44  ;;  %vm4832_vm0 = vcmask 1048512  }
 0x2a3   :  { %v5245_v47 = vpop.f32.mrb[20].mxu0 }
 0x2a4   :  { %v915_v48 = vadd.f32 %v5245_v47, %v5711_v46  ;;  %v906_v49 = vpop.f32.mrb[21].mxu0 }
 0x2a5   :  { %v907_v50 = vadd.f32 %v5711_v46, %v906_v49  ;;  %v5246_v4 = vpop.f32.mrb[22].mxu0 }
 0x2a6   :  { %v1067_v52 = vmax.f32 %v915_v48, 0.0  ;;  %v918_v53 = vadd.f32 %v5246_v4, %v5711_v46  ;;  %v909_v54 = vpop.f32.mrb[23].mxu0 }
 0x2a7   :  { %v1065_v55 = vmax.f32 %v907_v50, 0.0  ;;  %v910_v56 = vadd.f32 %v5711_v46, %v909_v54 }
 0x2a8   :  { %v1068_v57 = vmax.f32 %v918_v53, 0.0  ;;  %v1114_v58 = vmul.f32 %v5718_v51, %v1067_v52 }
 0x2a9   :  { %v1066_v59 = vmax.f32 %v910_v56, 0.0  ;;  %v1112_v60 = vmul.f32 %v5718_v51, %v1065_v55 }
 0x2aa   :  { %v1159_v61 = vsel %vm1152_vm1, %v1114_v58, 0.0  ;;  %v1115_v62 = vmul.f32 %v5718_v51, %v1068_v57 }
 0x2ab   :  { %1160 = vadd.xlane.f32.xlu1 %v1159_v61  ;;  %v5249_v63 = vpop.f32.mrb[24].mxu0  ;;  %v1153_v0 = vsel %vm1152_vm1, %v1112_v60, 0.0  ;;  %v1113_v1 = vmul.f32 %v5718_v51, %v1066_v59 }
 0x2ac   :  { %v931_v2 = vadd.f32 %v5249_v63, %v5711_v46  ;;  %v922_v3 = vpop.f32.mrb[25].mxu0  ;;  %1154 = vadd.xlane.f32.xlu0 %v1153_v0  ;;  %v1162_v11 = vsel %vm1152_vm1, %v1115_v62, 0.0 }
 0x2ad   :  { %v923_v5 = vadd.f32 %v5711_v46, %v922_v3  ;;  %v5250_v6 = vpop.f32.mrb[26].mxu0  ;;  %v1156_v15 = vsel %vm1152_vm1, %v1113_v1, 0.0 }
 0x2ae   :  { %v1071_v8 = vmax.f32 %v931_v2, 0.0  ;;  %v934_v9 = vadd.f32 %v5250_v6, %v5711_v46  ;;  %v925_v10 = vpop.f32.mrb[27].mxu0 }
 0x2af   :  { %v1069_v13 = vmax.f32 %v923_v5, 0.0  ;;  %v926_v14 = vadd.f32 %v5711_v46, %v925_v10  ;;  %1163 = vadd.xlane.f32.xlu1 %v1162_v11 }
 0x2b0   :  { %v1072_v16 = vmax.f32 %v934_v9, 0.0  ;;  %1157 = vadd.xlane.f32.xlu0 %v1156_v15  ;;  %v1118_v17 = vmul.f32 %v5718_v51, %v1071_v8 }
 0x2b1   :  { %v1070_v18 = vmax.f32 %v926_v14, 0.0  ;;  %v1116_v22 = vmul.f32 %v5718_v51, %v1069_v13 }
 0x2b2   :  { %v1171_v19 = vsel %vm1152_vm1, %v1118_v17, 0.0  ;;  %v1119_v20 = vmul.f32 %v5718_v51, %v1072_v16 }
 0x2b3   :  { %v5253_v21 = vpop.f32.mrb[28].mxu0  ;;  %v1117_v26 = vmul.f32 %v5718_v51, %v1070_v18  ;;  %v1165_v7 = vsel %vm1152_vm1, %v1116_v22, 0.0 }
 0x2b4   :  { %v947_v23 = vadd.f32 %v5253_v21, %v5711_v46  ;;  %v938_v24 = vpop.f32.mrb[29].mxu0  ;;  %1172 = vadd.xlane.f32.xlu0 %v1171_v19  ;;  %v1174_v25 = vsel %vm1152_vm1, %v1119_v20, 0.0 }
 0x2b5   :  { %v939_v27 = vadd.f32 %v5711_v46, %v938_v24  ;;  %1175 = vadd.xlane.f32.xlu1 %v1174_v25  ;;  %v5254_v28 = vpop.f32.mrb[30].mxu0  ;;  %v1168_v32 = vsel %vm1152_vm1, %v1117_v26, 0.0 }
 0x2b6   :  { %v1075_v29 = vmax.f32 %v947_v23, 0.0  ;;  %v950_v30 = vadd.f32 %v5254_v28, %v5711_v46  ;;  %v941_v12 = vpop.f32.mrb[31].mxu0 }
 0x2b7   :  { %v1073_v43 = vmax.f32 %v939_v27, 0.0  ;;  %v942_v40 = vadd.f32 %v5711_v46, %v941_v12 }
 0x2b8   :  { %v1076_v31 = vmax.f32 %v950_v30, 0.0  ;;  %1166 = vadd.xlane.f32.xlu0 %v1165_v7  ;;  %v1122_v33 = vmul.f32 %v5718_v51, %v1075_v29 }
 0x2b9   :  { %v1074_v34 = vmax.f32 %v942_v40, 0.0  ;;  %1169 = vadd.xlane.f32.xlu1 %v1168_v32  ;;  %v1120_v38 = vmul.f32 %v5718_v51, %v1073_v43 }
 0x2ba   :  { %v1183_v35 = vsel %vm1152_vm1, %v1122_v33, 0.0  ;;  %v1123_v36 = vmul.f32 %v5718_v51, %v1076_v31 }
 0x2bb   :  { %v5257_v37 = vpop.f32.mrb[32].mxu0  ;;  %v1121_v44 = vmul.f32 %v5718_v51, %v1074_v34  ;;  %v1177_v53 = vsel %vm1152_vm1, %v1120_v38, 0.0 }
 0x2bc   :  { %v963_v39 = vadd.f32 %v5257_v37, %v5711_v46  ;;  %v954_v41 = vpop.f32.mrb[33].mxu0  ;;  %1184 = vadd.xlane.f32.xlu0 %v1183_v35  ;;  %v1186_v42 = vsel %vm1152_vm1, %v1123_v36, 0.0 }
 0x2bd   :  { %v955_v45 = vadd.f32 %v5711_v46, %v954_v41  ;;  %v5258_v47 = vpop.f32.mrb[34].mxu0  ;;  %1187 = vadd.xlane.f32.xlu1 %v1186_v42  ;;  %v1180_v55 = vsel %vm1152_vm1, %v1121_v44, 0.0 }
 0x2be   :  { %v1079_v48 = vmax.f32 %v963_v39, 0.0  ;;  %v966_v49 = vadd.f32 %v5258_v47, %v5711_v46  ;;  %v957_v50 = vpop.f32.mrb[35].mxu0 }
 0x2bf   :  { %v1077_v4 = vmax.f32 %v955_v45, 0.0  ;;  %v958_v52 = vadd.f32 %v5711_v46, %v957_v50 }
 0x2c0   :  { %v1080_v54 = vmax.f32 %v966_v49, 0.0  ;;  %1178 = vadd.xlane.f32.xlu0 %v1177_v53  ;;  %v1126_v56 = vmul.f32 %v5718_v51, %v1079_v48 }
 0x2c1   :  { %v1078_v57 = vmax.f32 %v958_v52, 0.0  ;;  %1181 = vadd.xlane.f32.xlu1 %v1180_v55  ;;  %v1124_v61 = vmul.f32 %v5718_v51, %v1077_v4 }
 0x2c2   :  { %v1195_v58 = vsel %vm1152_vm1, %v1126_v56, 0.0  ;;  %v1127_v59 = vmul.f32 %v5718_v51, %v1080_v54 }
 0x2c3   :  { %v5261_v60 = vpop.f32.mrb[36].mxu0  ;;  %v1125_v1 = vmul.f32 %v5718_v51, %v1078_v57  ;;  %v1189_v11 = vsel %vm1152_vm1, %v1124_v61, 0.0 }
 0x2c4   :  { %v979_v62 = vadd.f32 %v5261_v60, %v5711_v46  ;;  %v970_v63 = vpop.f32.mrb[37].mxu0  ;;  %1196 = vadd.xlane.f32.xlu0 %v1195_v58  ;;  %v1198_v0 = vsel %vm1152_vm1, %v1127_v59, 0.0 }
 0x2c5   :  { %v971_v2 = vadd.f32 %v5711_v46, %v970_v63  ;;  %v5262_v3 = vpop.f32.mrb[38].mxu0  ;;  %1199 = vadd.xlane.f32.xlu1 %v1198_v0  ;;  %v1192_v14 = vsel %vm1152_vm1, %v1125_v1, 0.0 }
 0x2c6   :  { %v1083_v5 = vmax.f32 %v979_v62, 0.0  ;;  %v982_v6 = vadd.f32 %v5262_v3, %v5711_v46  ;;  %v973_v8 = vpop.f32.mrb[39].mxu0 }
 0x2c7   :  { %v1081_v9 = vmax.f32 %v971_v2, 0.0  ;;  %v974_v10 = vadd.f32 %v5711_v46, %v973_v8 }
 0x2c8   :  { %v1084_v13 = vmax.f32 %v982_v6, 0.0  ;;  %1190 = vadd.xlane.f32.xlu0 %v1189_v11  ;;  %v1130_v15 = vmul.f32 %v5718_v51, %v1083_v5 }
 0x2c9   :  { %v1082_v16 = vmax.f32 %v974_v10, 0.0  ;;  %1193 = vadd.xlane.f32.xlu1 %v1192_v14  ;;  %v1128_v20 = vmul.f32 %v5718_v51, %v1081_v9 }
 0x2ca   :  { %v1207_v17 = vsel %vm1152_vm1, %v1130_v15, 0.0  ;;  %v1131_v18 = vmul.f32 %v5718_v51, %v1084_v13 }
 0x2cb   :  { %v5265_v19 = vpop.f32.mrb[40].mxu0  ;;  %v1129_v24 = vmul.f32 %v5718_v51, %v1082_v16  ;;  %v1201_v43 = vsel %vm1152_vm1, %v1128_v20, 0.0 }
 0x2cc   :  { %v995_v21 = vadd.f32 %v5265_v19, %v5711_v46  ;;  %v986_v22 = vpop.f32.mrb[41].mxu0  ;;  %1208 = vadd.xlane.f32.xlu0 %v1207_v17  ;;  %v1210_v23 = vsel %vm1152_vm1, %v1131_v18, 0.0 }
 0x2cd   :  { %v987_v25 = vadd.f32 %v5711_v46, %v986_v22  ;;  %v5266_v26 = vpop.f32.mrb[42].mxu0  ;;  %1211 = vadd.xlane.f32.xlu1 %v1210_v23  ;;  %v1204_v7 = vsel %vm1152_vm1, %v1129_v24, 0.0 }
 0x2ce   :  { %v1087_v27 = vmax.f32 %v995_v21, 0.0  ;;  %v998_v28 = vadd.f32 %v5266_v26, %v5711_v46  ;;  %v989_v29 = vpop.f32.mrb[43].mxu0 }
 0x2cf   :  { %v1085_v30 = vmax.f32 %v987_v25, 0.0  ;;  %v990_v12 = vadd.f32 %v5711_v46, %v989_v29 }
 0x2d0   :  { %v1088_v40 = vmax.f32 %v998_v28, 0.0  ;;  %1202 = vadd.xlane.f32.xlu0 %v1201_v43  ;;  %v1134_v31 = vmul.f32 %v5718_v51, %v1087_v27 }
 0x2d1   :  { %v1086_v32 = vmax.f32 %v990_v12, 0.0  ;;  %1205 = vadd.xlane.f32.xlu1 %v1204_v7  ;;  %v1132_v36 = vmul.f32 %v5718_v51, %v1085_v30 }
 0x2d2   :  { %v1219_v33 = vsel %vm1152_vm1, %v1134_v31, 0.0  ;;  %v1135_v34 = vmul.f32 %v5718_v51, %v1088_v40 }
 0x2d3   :  { %v5269_v35 = vpop.f32.mrb[44].mxu0  ;;  %v1133_v41 = vmul.f32 %v5718_v51, %v1086_v32  ;;  %v1213_v4 = vsel %vm1152_vm1, %v1132_v36, 0.0 }
 0x2d4   :  { %v1011_v37 = vadd.f32 %v5269_v35, %v5711_v46  ;;  %v1002_v38 = vpop.f32.mrb[45].mxu0  ;;  %1220 = vadd.xlane.f32.xlu0 %v1219_v33  ;;  %v1222_v39 = vsel %vm1152_vm1, %v1135_v34, 0.0 }
 0x2d5   :  { %v1003_v42 = vadd.f32 %v5711_v46, %v1002_v38  ;;  %v5270_v44 = vpop.f32.mrb[46].mxu0  ;;  %1223 = vadd.xlane.f32.xlu1 %v1222_v39  ;;  %v1216_v53 = vsel %vm1152_vm1, %v1133_v41, 0.0 }
 0x2d6   :  { %v1091_v45 = vmax.f32 %v1011_v37, 0.0  ;;  %v1014_v47 = vadd.f32 %v5270_v44, %v5711_v46  ;;  %v1005_v48 = vpop.f32.mrb[47].mxu0 }
 0x2d7   :  { %v1089_v49 = vmax.f32 %v1003_v42, 0.0  ;;  %v1006_v50 = vadd.f32 %v5711_v46, %v1005_v48 }
 0x2d8   :  { %v1092_v52 = vmax.f32 %v1014_v47, 0.0  ;;  %1214 = vadd.xlane.f32.xlu0 %v1213_v4  ;;  %v1138_v54 = vmul.f32 %v5718_v51, %v1091_v45 }
 0x2d9   :  { %v1090_v55 = vmax.f32 %v1006_v50, 0.0  ;;  %1217 = vadd.xlane.f32.xlu1 %v1216_v53  ;;  %v1136_v59 = vmul.f32 %v5718_v51, %v1089_v49 }
 0x2da   :  { %v1231_v56 = vsel %vm1152_vm1, %v1138_v54, 0.0  ;;  %v1139_v57 = vmul.f32 %v5718_v51, %v1092_v52 }
 0x2db   :  { %v5273_v58 = vpop.f32.mrb[48].mxu0  ;;  %v1137_v63 = vmul.f32 %v5718_v51, %v1090_v55  ;;  %v1225_v9 = vsel %vm1152_vm1, %v1136_v59, 0.0 }
 0x2dc   :  { %v1027_v60 = vadd.f32 %v5273_v58, %v5711_v46  ;;  %v1018_v61 = vpop.f32.mrb[49].mxu0  ;;  %1232 = vadd.xlane.f32.xlu0 %v1231_v56  ;;  %v1234_v62 = vsel %vm1152_vm1, %v1139_v57, 0.0 }
 0x2dd   :  { %v1019_v0 = vadd.f32 %v5711_v46, %v1018_v61  ;;  %v5274_v1 = vpop.f32.mrb[50].mxu0  ;;  %1235 = vadd.xlane.f32.xlu1 %v1234_v62  ;;  %v1228_v11 = vsel %vm1152_vm1, %v1137_v63, 0.0  ;;  %v5337_v62 = vmov 1966171168  }
 0x2de   :  { %v1095_v2 = vmax.f32 %v1027_v60, 0.0  ;;  %v1030_v3 = vadd.f32 %v5274_v1, %v5711_v46  ;;  %v1021_v5 = vpop.f32.mrb[51].mxu0  ;;  %v1279_v60 = vlaneseq  ;;  %v2648_v63 = vunpack.c.l.s4 %v5337_v62  ;;  %v1277_v1 = vpop.permute.xlu0 %1276 }
 0x2df   :  { %v1093_v6 = vmax.f32 %v1019_v0, 0.0  ;;  %v1022_v8 = vadd.f32 %v5711_v46, %v1021_v5 }
 0x2e0   :  { %v1096_v10 = vmax.f32 %v1030_v3, 0.0  ;;  %1226 = vadd.xlane.f32.xlu0 %v1225_v9  ;;  %v1142_v13 = vmul.f32 %v5718_v51, %v1095_v2  ;;  %v5839_v61 = vshrl.u32 %v1279_v60, 7  ;;  %v2649_v2 = vunpack.c.0.s8 %v2648_v63 }
 0x2e1   :  { %v1094_v14 = vmax.f32 %v1022_v8, 0.0  ;;  %1229 = vadd.xlane.f32.xlu1 %v1228_v11  ;;  %v1140_v18 = vmul.f32 %v5718_v51, %v1093_v6 }
 0x2e2   :  { %v1243_v15 = vsel %vm1152_vm1, %v1142_v13, 0.0  ;;  %v1143_v16 = vmul.f32 %v5718_v51, %v1096_v10  ;;  %v5842_v0 = vsub.s32 0, %v5839_v61  ;;  %v5848_v3 = vsub.s32 1, %v5839_v61 }
 0x2e3   :  { %v5277_v17 = vpop.f32.mrb[52].mxu0  ;;  %v1141_v22 = vmul.f32 %v5718_v51, %v1094_v14  ;;  %v1237_v30 = vsel %vm1152_vm1, %v1140_v18, 0.0  ;;  %v5851_v5 = vsub.s32 2, %v5839_v61  ;;  %v5854_v6 = vsub.s32 3, %v5839_v61 }
 0x2e4   :  { %v1043_v19 = vadd.f32 %v5277_v17, %v5711_v46  ;;  %v1034_v20 = vpop.f32.mrb[53].mxu0  ;;  %1244 = vadd.xlane.f32.xlu0 %v1243_v15  ;;  %v1246_v21 = vsel %vm1152_vm1, %v1143_v16, 0.0  ;;  %v5857_v9 = vsub.s32 4, %v5839_v61  ;;  %v5860_v10 = vsub.s32 5, %v5839_v61 }
 0x2e5   :  { %v1035_v23 = vadd.f32 %v5711_v46, %v1034_v20  ;;  %v5278_v24 = vpop.f32.mrb[54].mxu0  ;;  %1247 = vadd.xlane.f32.xlu1 %v1246_v21  ;;  %v1240_v43 = vsel %vm1152_vm1, %v1141_v22, 0.0  ;;  %v5863_v11 = vsub.s32 6, %v5839_v61  ;;  %v5866_v13 = vsub.s32 7, %v5839_v61 }
 0x2e6   :  { %v1099_v25 = vmax.f32 %v1043_v19, 0.0  ;;  %v1046_v26 = vadd.f32 %v5278_v24, %v5711_v46  ;;  %v1037_v27 = vpop.f32.mrb[55].mxu0  ;;  %v5871_v17 = vsub.s32 %v2649_v2, %v5839_v61 }
 0x2e7   :  { %v1097_v28 = vmax.f32 %v1035_v23, 0.0  ;;  %v1038_v29 = vadd.f32 %v5711_v46, %v1037_v27 }
 0x2e8   :  { %v1100_v12 = vmax.f32 %v1046_v26, 0.0  ;;  %1238 = vadd.xlane.f32.xlu0 %v1237_v30  ;;  %v1146_v40 = vmul.f32 %v5718_v51, %v1099_v25 }
 0x2e9   :  { %v1098_v7 = vmax.f32 %v1038_v29, 0.0  ;;  %1241 = vadd.xlane.f32.xlu1 %v1240_v43  ;;  %v1144_v34 = vmul.f32 %v5718_v51, %v1097_v28 }
 0x2ea   :  { %v1255_v31 = vsel %vm1152_vm1, %v1146_v40, 0.0  ;;  %v1147_v32 = vmul.f32 %v5718_v51, %v1100_v12 }
 0x2eb   :  { %v5281_v33 = vpop.f32.mrb[56].mxu0  ;;  %v1145_v38 = vmul.f32 %v5718_v51, %v1098_v7  ;;  %v1249_v49 = vsel %vm1152_vm1, %v1144_v34, 0.0 }
 0x2ec   :  { %v1059_v35 = vadd.f32 %v5281_v33, %v5711_v46  ;;  %v1050_v36 = vpop.f32.mrb[57].mxu0  ;;  %1256 = vadd.xlane.f32.xlu0 %v1255_v31  ;;  %v1258_v37 = vsel %vm1152_vm1, %v1147_v32, 0.0 }
 0x2ed   :  { %v1051_v39 = vadd.f32 %v5711_v46, %v1050_v36  ;;  %v5282_v41 = vpop.f32.mrb[58].mxu0  ;;  %1259 = vadd.xlane.f32.xlu1 %v1258_v37  ;;  %v1252_v4 = vsel %vm1152_vm1, %v1145_v38, 0.0 }
 0x2ee   :  { %v1103_v42 = vmax.f32 %v1059_v35, 0.0  ;;  %v1062_v44 = vadd.f32 %v5282_v41, %v5711_v46  ;;  %v1053_v45 = vpop.f32.mrb[59].mxu0 }
 0x2ef   :  { %v1101_v47 = vmax.f32 %v1051_v39, 0.0  ;;  %v1054_v48 = vadd.f32 %v5711_v46, %v1053_v45 }
 0x2f0   :  { %v1104_v50 = vmax.f32 %v1062_v44, 0.0  ;;  %1250 = vadd.xlane.f32.xlu0 %v1249_v49  ;;  %v1150_v52 = vmul.f32 %v5718_v51, %v1103_v42 }
 0x2f1   :  { %v1102_v53 = vmax.f32 %v1054_v48, 0.0  ;;  %1253 = vadd.xlane.f32.xlu1 %v1252_v4  ;;  %v1148_v56 = vmul.f32 %v5718_v51, %v1101_v47 }
 0x2f2   :  { %v1267_v54 = vsel %vm1152_vm1, %v1150_v52, 0.0  ;;  %v1151_v55 = vmul.f32 %v5718_v51, %v1104_v50 }
 0x2f3   :  { %v1149_v46 = vmul.f32 %v5718_v51, %v1102_v53  ;;  %v1261_v58 = vsel %vm1152_vm1, %v1148_v56, 0.0  ;;  %v5845_v51 = vrot.slane %v1277_v1, %v5842_v0 }
 0x2f4   :  { %1268 = vadd.xlane.f32.xlu0 %v1267_v54  ;;  %v1270_v57 = vsel %vm1152_vm1, %v1151_v55, 0.0 }
 0x2f5   :  { %1271 = vadd.xlane.f32.xlu1 %v1270_v57  ;;  %v1264_v59 = vsel %vm1152_vm1, %v1149_v46, 0.0  ;;  %vm4978_vm1 = vcmp.lt.s32.totalorder %v1279_v60, 320 }
 0x2f8   :  { %1262 = vadd.xlane.f32.xlu0 %v1261_v58 }
 0x2f9   :  { %1265 = vadd.xlane.f32.xlu1 %v1264_v59 }
 0x338   :  { %v1161_v8 = vpop.xlane.xlu1 %1160 }
 0x339   :  { %v1285_v14 = vadd.f32 %v5845_v51, %v1161_v8  ;;  %v1155_v15 = vpop.xlane.xlu0 %1154 }
 0x33a   :  { %v1283_v16 = vadd.f32 %v5845_v51, %v1155_v15 }
 0x33b   :  { %v1430_v18 = vrot.slane %v1285_v14, %v5842_v0  ;;  %v1434_v19 = vrot.slane %v1285_v14, %v5848_v3  ;;  %v1438_v20 = vrot.slane %v1285_v14, %v5851_v5  ;;  %v1442_v21 = vrot.slane %v1285_v14, %v5854_v6 }
 0x33c   :  { %v1164_v22 = vpop.xlane.xlu1 %1163  ;;  %v1446_v23 = vrot.slane %v1285_v14, %v5857_v9  ;;  %v1450_v24 = vrot.slane %v1285_v14, %v5860_v10  ;;  %v1454_v25 = vrot.slane %v1285_v14, %v5863_v11  ;;  %v1458_v26 = vrot.slane %v1285_v14, %v5866_v13 }
 0x33d   :  { %v1286_v27 = vadd.f32 %v5845_v51, %v1164_v22  ;;  %v1158_v28 = vpop.xlane.xlu0 %1157  ;;  %v2741_v29 = vcombine.low %v1430_v18, %v1434_v19  ;;  %v2742_v30 = vcombine.low %v1438_v20, %v1442_v21  ;;  %v1366_v12 = vrot.slane %v1283_v16, %v5842_v0 }
 0x33e   :  { %v5884_v43 = vadd.f32 %v5845_v51, %v1158_v28  ;;  %v2743_v40 = vcombine.low %v1446_v23, %v1450_v24  ;;  %v2744_v7 = vcombine.low %v1454_v25, %v1458_v26  ;;  %v1370_v31 = vrot.slane %v1283_v16, %v5848_v3 }
 0x33f   :  { %v2751_v32 = vrot.slane %v2741_v29, %v5871_v17  ;;  %v2758_v33 = vrot.slane %v2742_v30, %v5871_v17  ;;  %v1374_v34 = vrot.slane %v1283_v16, %v5851_v5  ;;  %v1378_v35 = vrot.slane %v1283_v16, %v5854_v6 }
 0x340   :  { %v2765_v36 = vrot.slane %v2743_v40, %v5871_v17  ;;  %v2772_v37 = vrot.slane %v2744_v7, %v5871_v17  ;;  %v1382_v38 = vrot.slane %v1283_v16, %v5857_v9  ;;  %v1386_v39 = vrot.slane %v1283_v16, %v5860_v10 }
 0x341   :  { %v1173_v41 = vpop.xlane.xlu0 %1172  ;;  %v2773_v42 = vcombine.low %v2751_v32, %v2758_v33  ;;  %v1390_v44 = vrot.slane %v1283_v16, %v5863_v11  ;;  %v1394_v45 = vrot.slane %v1283_v16, %v5866_v13  ;;  %v2643_v47 = vcombine.low %v1366_v12, %v1370_v31 }
 0x342   :  { %v5898_v48 = vadd.f32 %v5845_v51, %v1173_v41  ;;  %v1176_v49 = vpop.xlane.xlu1 %1175  ;;  %v2774_v50 = vcombine.low %v2765_v36, %v2772_v37  ;;  %v2644_v4 = vcombine.low %v1374_v34, %v1378_v35  ;;  %v2645_v52 = vcombine.low %v1382_v38, %v1386_v39 }
 0x343   :  { %v5901_v53 = vadd.f32 %v5845_v51, %v1176_v49  ;;  %v2781_v54 = vrot.slane %v2773_v42, %v5871_v17  ;;  %v2646_v55 = vcombine.low %v1390_v44, %v1394_v45  ;;  %v2653_v56 = vrot.slane %v2643_v47, %v5871_v17 }
 0x344   :  { %v2788_v57 = vrot.slane %v2774_v50, %v5871_v17  ;;  %v2660_v46 = vrot.slane %v2644_v4, %v5871_v17  ;;  %v2667_v58 = vrot.slane %v2645_v52, %v5871_v17  ;;  %v1462_v59 = vrot.slane %v1286_v27, %v5842_v0 }
 0x345   :  { %v1167_v62 = vpop.xlane.xlu0 %1166  ;;  %v2674_v63 = vrot.slane %v2646_v55, %v5871_v17  ;;  %v1466_v1 = vrot.slane %v1286_v27, %v5848_v3  ;;  %v1470_v2 = vrot.slane %v1286_v27, %v5851_v5  ;;  %v1474_v8 = vrot.slane %v1286_v27, %v5854_v6 }
 0x346   :  { %v5914_v14 = vadd.f32 %v5845_v51, %v1167_v62  ;;  %v1170_v15 = vpop.xlane.xlu1 %1169  ;;  %v2789_v16 = vcombine.low %v2781_v54, %v2788_v57  ;;  %v2675_v18 = vcombine.low %v2653_v56, %v2660_v46  ;;  %v1478_v19 = vrot.slane %v1286_v27, %v5857_v9 }
 0x347   :  { %v5918_v20 = vadd.f32 %v5845_v51, %v1170_v15  ;;  %v2676_v21 = vcombine.low %v2667_v58, %v2674_v63  ;;  %v1482_v22 = vrot.slane %v1286_v27, %v5860_v10  ;;  %v1486_v23 = vrot.slane %v1286_v27, %v5863_v11 }
 0x348   :  { %4610 = vperm.xlu1 %5295, %v2789_v16   ;;  %v2683_v24 = vrot.slane %v2675_v18, %v5871_v17  ;;  %v1490_v25 = vrot.slane %v1286_v27, %v5866_v13  ;;  %v2790_v26 = vcombine.low %v1462_v59, %v1466_v1  ;;  %v2791_v28 = vcombine.low %v1470_v2, %v1474_v8 }
 0x349   :  { %v1185_v29 = vpop.xlane.xlu0 %1184  ;;  %v2690_v30 = vrot.slane %v2676_v21, %v5871_v17  ;;  %v2792_v12 = vcombine.low %v1478_v19, %v1482_v22  ;;  %v1398_v40 = vrot.slane %v5884_v43, %v5842_v0  ;;  %v1402_v7 = vrot.slane %v5884_v43, %v5848_v3 }
 0x34a   :  { %v5930_v31 = vadd.f32 %v5845_v51, %v1185_v29  ;;  %v1188_v32 = vpop.xlane.xlu1 %1187  ;;  %v2793_v33 = vcombine.low %v1486_v23, %v1490_v25  ;;  %v2800_v34 = vrot.slane %v2790_v26, %v5871_v17  ;;  %v2807_v27 = vrot.slane %v2791_v28, %v5871_v17 }
 0x34b   :  { %v5935_v35 = vadd.f32 %v5845_v51, %v1188_v32  ;;  %v2691_v36 = vcombine.low %v2683_v24, %v2690_v30  ;;  %v2814_v37 = vrot.slane %v2792_v12, %v5871_v17  ;;  %v1406_v38 = vrot.slane %v5884_v43, %v5851_v5 }
 0x34c   :  { %v2821_v39 = vrot.slane %v2793_v33, %v5871_v17  ;;  %v2822_v41 = vcombine.low %v2800_v34, %v2807_v27  ;;  %v1410_v42 = vrot.slane %v5884_v43, %v5854_v6  ;;  %v1414_v44 = vrot.slane %v5884_v43, %v5857_v9 }
 0x34d   :  { %4604 = vperm.xlu1 %5295, %v2691_v36   ;;  %v1179_v45 = vpop.xlane.xlu0 %1178  ;;  %v1418_v47 = vrot.slane %v5884_v43, %v5860_v10  ;;  %v1422_v49 = vrot.slane %v5884_v43, %v5863_v11  ;;  %v1426_v50 = vrot.slane %v5884_v43, %v5866_v13  ;;  %v2692_v4 = vcombine.low %v1398_v40, %v1402_v7 }
 0x34e   :  { %v5952_v52 = vadd.f32 %v5845_v51, %v1179_v45  ;;  %v1182_v54 = vpop.xlane.xlu1 %1181  ;;  %v2823_v55 = vcombine.low %v2814_v37, %v2821_v39  ;;  %v2830_v56 = vrot.slane %v2822_v41, %v5871_v17  ;;  %v2693_v57 = vcombine.low %v1406_v38, %v1410_v42 }
 0x34f   :  { %v5956_v46 = vadd.f32 %v5845_v51, %v1182_v54  ;;  %v2694_v58 = vcombine.low %v1414_v44, %v1418_v47  ;;  %v2695_v59 = vcombine.low %v1422_v49, %v1426_v50  ;;  %v2702_v62 = vrot.slane %v2692_v4, %v5871_v17 }
 0x350   :  { %v2837_v63 = vrot.slane %v2823_v55, %v5871_v17  ;;  %v2709_v43 = vrot.slane %v2693_v57, %v5871_v17  ;;  %v1558_v1 = vrot.slane %v5898_v48, %v5842_v0  ;;  %v1562_v2 = vrot.slane %v5898_v48, %v5848_v3 }
 0x351   :  { %v1197_v8 = vpop.xlane.xlu0 %1196  ;;  %v2716_v15 = vrot.slane %v2694_v58, %v5871_v17  ;;  %v2723_v16 = vrot.slane %v2695_v59, %v5871_v17  ;;  %v1566_v18 = vrot.slane %v5898_v48, %v5851_v5  ;;  %v1570_v19 = vrot.slane %v5898_v48, %v5854_v6 }
 0x352   :  { %v2838_v21 = vcombine.low %v2830_v56, %v2837_v63  ;;  %v5972_v22 = vadd.f32 %v5845_v51, %v1197_v8  ;;  %v1200_v23 = vpop.xlane.xlu1 %1199  ;;  %v2724_v24 = vcombine.low %v2702_v62, %v2709_v43  ;;  %v1574_v25 = vrot.slane %v5898_v48, %v5857_v9 }
 0x353   :  { %v5977_v26 = vadd.f32 %v5845_v51, %v1200_v23  ;;  %v2725_v28 = vcombine.low %v2716_v15, %v2723_v16  ;;  %v1578_v29 = vrot.slane %v5898_v48, %v5860_v10  ;;  %v1582_v30 = vrot.slane %v5898_v48, %v5863_v11 }
 0x354   :  { %4613 = vperm.xlu1 %5295, %v2838_v21   ;;  %v2732_v12 = vrot.slane %v2724_v24, %v5871_v17  ;;  %v1586_v40 = vrot.slane %v5898_v48, %v5866_v13  ;;  %v2937_v7 = vcombine.low %v1558_v1, %v1562_v2  ;;  %v2938_v32 = vcombine.low %v1566_v18, %v1570_v19 }
 0x355   :  { %v2739_v33 = vrot.slane %v2725_v28, %v5871_v17  ;;  %v1191_v34 = vpop.xlane.xlu0 %1190  ;;  %v2939_v27 = vcombine.low %v1574_v25, %v1578_v29  ;;  %v1686_v36 = vrot.slane %v5930_v31, %v5842_v0  ;;  %v1690_v37 = vrot.slane %v5930_v31, %v5848_v3 }
 0x356   :  { %v5992_v38 = vadd.f32 %v5845_v51, %v1191_v34  ;;  %v1194_v39 = vpop.xlane.xlu1 %1193  ;;  %v2940_v41 = vcombine.low %v1582_v30, %v1586_v40  ;;  %v2947_v42 = vrot.slane %v2937_v7, %v5871_v17  ;;  %v2954_v48 = vrot.slane %v2938_v32, %v5871_v17 }
 0x357   :  { %v2740_v44 = vcombine.low %v2732_v12, %v2739_v33  ;;  %v5997_v45 = vadd.f32 %v5845_v51, %v1194_v39  ;;  %v2961_v47 = vrot.slane %v2939_v27, %v5871_v17  ;;  %v1694_v49 = vrot.slane %v5930_v31, %v5851_v5 }
 0x358   :  { %v2968_v50 = vrot.slane %v2940_v41, %v5871_v17  ;;  %v2969_v4 = vcombine.low %v2947_v42, %v2954_v48  ;;  %v1698_v54 = vrot.slane %v5930_v31, %v5854_v6  ;;  %v1702_v55 = vrot.slane %v5930_v31, %v5857_v9 }
 0x359   :  { %4607 = vperm.xlu1 %5295, %v2740_v44   ;;  %v1706_v56 = vrot.slane %v5930_v31, %v5860_v10  ;;  %v1710_v57 = vrot.slane %v5930_v31, %v5863_v11  ;;  %v1714_v58 = vrot.slane %v5930_v31, %v5866_v13  ;;  %v3133_v59 = vcombine.low %v1686_v36, %v1690_v37  ;;  %v1209_v62 = vpop.xlane.xlu0 %1208 }
 0x35a   :  { %v2970_v63 = vcombine.low %v2961_v47, %v2968_v50  ;;  %v2977_v43 = vrot.slane %v2969_v4, %v5871_v17  ;;  %v3134_v1 = vcombine.low %v1694_v49, %v1698_v54  ;;  %v6015_v2 = vadd.f32 %v5845_v51, %v1209_v62  ;;  %v1212_v8 = vpop.xlane.xlu1 %1211 }
 0x35b   :  { %v3135_v15 = vcombine.low %v1702_v55, %v1706_v56  ;;  %v3136_v16 = vcombine.low %v1710_v57, %v1714_v58  ;;  %v3143_v18 = vrot.slane %v3133_v59, %v5871_v17  ;;  %v6019_v19 = vadd.f32 %v5845_v51, %v1212_v8 }
 0x35c   :  { %v2984_v21 = vrot.slane %v2970_v63, %v5871_v17  ;;  %v3150_v31 = vrot.slane %v3134_v1, %v5871_v17  ;;  %v1494_v23 = vrot.slane %v5914_v14, %v5842_v0  ;;  %v1498_v24 = vrot.slane %v5914_v14, %v5848_v3 }
 0x35d   :  { %v3157_v25 = vrot.slane %v3135_v15, %v5871_v17  ;;  %v3164_v28 = vrot.slane %v3136_v16, %v5871_v17  ;;  %v1502_v29 = vrot.slane %v5914_v14, %v5851_v5  ;;  %v1506_v30 = vrot.slane %v5914_v14, %v5854_v6  ;;  %v1203_v55 = vpop.xlane.xlu0 %1202 }
 0x35e   :  { %v2985_v12 = vcombine.low %v2977_v43, %v2984_v21  ;;  %v3165_v40 = vcombine.low %v3143_v18, %v3150_v31  ;;  %v1510_v7 = vrot.slane %v5914_v14, %v5857_v9  ;;  %v1514_v32 = vrot.slane %v5914_v14, %v5860_v10  ;;  %v1206_v62 = vpop.xlane.xlu1 %1205 }
 0x35f   :  { %v3166_v33 = vcombine.low %v3157_v25, %v3164_v28  ;;  %v1518_v34 = vrot.slane %v5914_v14, %v5863_v11  ;;  %v1522_v27 = vrot.slane %v5914_v14, %v5866_v13  ;;  %v2839_v36 = vcombine.low %v1494_v23, %v1498_v24 }
 0x360   :  { %4622 = vperm.xlu1 %5295, %v2985_v12   ;;  %v3173_v37 = vrot.slane %v3165_v40, %v5871_v17  ;;  %v2840_v39 = vcombine.low %v1502_v29, %v1506_v30  ;;  %v2841_v41 = vcombine.low %v1510_v7, %v1514_v32  ;;  %v1622_v42 = vrot.slane %v5952_v52, %v5842_v0 }
 0x361   :  { %v3180_v48 = vrot.slane %v3166_v33, %v5871_v17  ;;  %v2842_v44 = vcombine.low %v1518_v34, %v1522_v27  ;;  %v2849_v47 = vrot.slane %v2839_v36, %v5871_v17  ;;  %v1626_v49 = vrot.slane %v5952_v52, %v5848_v3 }
 0x362   :  { %v2856_v50 = vrot.slane %v2840_v39, %v5871_v17  ;;  %v2863_v14 = vrot.slane %v2841_v41, %v5871_v17  ;;  %v1630_v4 = vrot.slane %v5952_v52, %v5851_v5  ;;  %v1634_v54 = vrot.slane %v5952_v52, %v5854_v6 }
 0x363   :  { %v3181_v56 = vcombine.low %v3173_v37, %v3180_v48  ;;  %v2870_v57 = vrot.slane %v2842_v44, %v5871_v17  ;;  %v1638_v58 = vrot.slane %v5952_v52, %v5857_v9  ;;  %v1642_v59 = vrot.slane %v5952_v52, %v5860_v10 }
 0x364   :  { %v2871_v63 = vcombine.low %v2849_v47, %v2856_v50  ;;  %v1646_v43 = vrot.slane %v5952_v52, %v5863_v11  ;;  %v1650_v1 = vrot.slane %v5952_v52, %v5866_v13  ;;  %v3035_v8 = vcombine.low %v1622_v42, %v1626_v49 }
 0x365   :  { %4634 = vperm.xlu0 %5294, %v3181_v56   ;;  %v2872_v15 = vcombine.low %v2863_v14, %v2870_v57  ;;  %v3036_v16 = vcombine.low %v1630_v4, %v1634_v54  ;;  %v3037_v18 = vcombine.low %v1638_v58, %v1642_v59  ;;  %v6064_v21 = vadd.f32 %v5845_v51, %v1203_v55  ;;  %v1221_v58 = vpop.xlane.xlu0 %1220 }
 0x366   :  { %v2879_v31 = vrot.slane %v2871_v63, %v5871_v17  ;;  %v3038_v23 = vcombine.low %v1646_v43, %v1650_v1  ;;  %v3045_v24 = vrot.slane %v3035_v8, %v5871_v17  ;;  %v6069_v25 = vadd.f32 %v5845_v51, %v1206_v62  ;;  %v1224_v1 = vpop.xlane.xlu1 %1223 }
 0x367   :  { %v2886_v28 = vrot.slane %v2872_v15, %v5871_v17  ;;  %v3052_v52 = vrot.slane %v3036_v16, %v5871_v17  ;;  %v3059_v29 = vrot.slane %v3037_v18, %v5871_v17  ;;  %v1590_v30 = vrot.slane %v5901_v53, %v5842_v0 }
 0x368   :  { %v3066_v12 = vrot.slane %v3038_v23, %v5871_v17  ;;  %v1594_v40 = vrot.slane %v5901_v53, %v5848_v3  ;;  %v1598_v7 = vrot.slane %v5901_v53, %v5851_v5  ;;  %v1602_v32 = vrot.slane %v5901_v53, %v5854_v6 }
 0x369   :  { %v2887_v33 = vcombine.low %v2879_v31, %v2886_v28  ;;  %v3067_v34 = vcombine.low %v3045_v24, %v3052_v52  ;;  %v1606_v27 = vrot.slane %v5901_v53, %v5857_v9  ;;  %v1610_v36 = vrot.slane %v5901_v53, %v5860_v10 }
 0x36a   :  { %v3068_v37 = vcombine.low %v3059_v29, %v3066_v12  ;;  %v1614_v39 = vrot.slane %v5901_v53, %v5863_v11  ;;  %v1618_v41 = vrot.slane %v5901_v53, %v5866_v13  ;;  %v2986_v42 = vcombine.low %v1590_v30, %v1594_v40 }
 0x36b   :  { %4616 = vperm.xlu1 %5295, %v2887_v33   ;;  %v3075_v48 = vrot.slane %v3067_v34, %v5871_v17  ;;  %v2987_v44 = vcombine.low %v1598_v7, %v1602_v32  ;;  %v2988_v47 = vcombine.low %v1606_v27, %v1610_v36  ;;  %v1814_v49 = vrot.slane %v5972_v22, %v5842_v0 }
 0x36c   :  { %v3082_v50 = vrot.slane %v3068_v37, %v5871_v17  ;;  %v2989_v14 = vcombine.low %v1614_v39, %v1618_v41  ;;  %v2996_v4 = vrot.slane %v2986_v42, %v5871_v17  ;;  %v1818_v54 = vrot.slane %v5972_v22, %v5848_v3 }
 0x36d   :  { %v3003_v55 = vrot.slane %v2987_v44, %v5871_v17  ;;  %v3010_v53 = vrot.slane %v2988_v47, %v5871_v17  ;;  %v1822_v56 = vrot.slane %v5972_v22, %v5851_v5  ;;  %v1826_v57 = vrot.slane %v5972_v22, %v5854_v6 }
 0x36e   :  { %v3083_v59 = vcombine.low %v3075_v48, %v3082_v50  ;;  %v3017_v62 = vrot.slane %v2989_v14, %v5871_v17  ;;  %v1830_v63 = vrot.slane %v5972_v22, %v5857_v9  ;;  %v1834_v43 = vrot.slane %v5972_v22, %v5860_v10 }
 0x36f   :  { %v3018_v8 = vcombine.low %v2996_v4, %v3003_v55  ;;  %v1838_v15 = vrot.slane %v5972_v22, %v5863_v11  ;;  %v1842_v16 = vrot.slane %v5972_v22, %v5866_v13  ;;  %v3329_v18 = vcombine.low %v1814_v49, %v1818_v54 }
 0x370   :  { %4628 = vperm.xlu0 %5294, %v3083_v59   ;;  %v3019_v31 = vcombine.low %v3010_v53, %v3017_v62  ;;  %v3330_v23 = vcombine.low %v1822_v56, %v1826_v57  ;;  %v3331_v24 = vcombine.low %v1830_v63, %v1834_v43  ;;  %v6114_v28 = vadd.f32 %v5845_v51, %v1221_v58  ;;  %v1215_v63 = vpop.xlane.xlu0 %1214 }
 0x371   :  { %v3026_v52 = vrot.slane %v3018_v8, %v5871_v17  ;;  %v3332_v29 = vcombine.low %v1838_v15, %v1842_v16  ;;  %v3339_v30 = vrot.slane %v3329_v18, %v5871_v17  ;;  %v6119_v12 = vadd.f32 %v5845_v51, %v1224_v1  ;;  %v1218_v16 = vpop.xlane.xlu1 %1217 }
 0x372   :  { %v3033_v40 = vrot.slane %v3019_v31, %v5871_v17  ;;  %v3346_v22 = vrot.slane %v3330_v23, %v5871_v17  ;;  %v3353_v7 = vrot.slane %v3331_v24, %v5871_v17  ;;  %v1526_v32 = vrot.slane %v5918_v20, %v5842_v0 }
 0x373   :  { %v3360_v33 = vrot.slane %v3332_v29, %v5871_v17  ;;  %v1530_v34 = vrot.slane %v5918_v20, %v5848_v3  ;;  %v1534_v27 = vrot.slane %v5918_v20, %v5851_v5  ;;  %v1538_v36 = vrot.slane %v5918_v20, %v5854_v6 }
 0x374   :  { %v3034_v37 = vcombine.low %v3026_v52, %v3033_v40  ;;  %v3361_v39 = vcombine.low %v3339_v30, %v3346_v22  ;;  %v1542_v41 = vrot.slane %v5918_v20, %v5857_v9  ;;  %v1546_v42 = vrot.slane %v5918_v20, %v5860_v10 }
 0x375   :  { %v3362_v48 = vcombine.low %v3353_v7, %v3360_v33  ;;  %v1550_v44 = vrot.slane %v5918_v20, %v5863_v11  ;;  %v1554_v47 = vrot.slane %v5918_v20, %v5866_v13  ;;  %v2888_v49 = vcombine.low %v1526_v32, %v1530_v34 }
 0x376   :  { %4625 = vperm.xlu1 %5295, %v3034_v37   ;;  %v3369_v50 = vrot.slane %v3361_v39, %v5871_v17  ;;  %v2889_v14 = vcombine.low %v1534_v27, %v1538_v36  ;;  %v2890_v4 = vcombine.low %v1542_v41, %v1546_v42  ;;  %v1750_v54 = vrot.slane %v5992_v38, %v5842_v0 }
 0x377   :  { %v3376_v55 = vrot.slane %v3362_v48, %v5871_v17  ;;  %v2891_v53 = vcombine.low %v1550_v44, %v1554_v47  ;;  %v2898_v56 = vrot.slane %v2888_v49, %v5871_v17  ;;  %v1754_v57 = vrot.slane %v5992_v38, %v5848_v3 }
 0x378   :  { %v2905_v58 = vrot.slane %v2889_v14, %v5871_v17  ;;  %v2912_v20 = vrot.slane %v2890_v4, %v5871_v17  ;;  %v1758_v59 = vrot.slane %v5992_v38, %v5851_v5  ;;  %v1762_v62 = vrot.slane %v5992_v38, %v5854_v6 }
 0x379   :  { %v3377_v43 = vcombine.low %v3369_v50, %v3376_v55  ;;  %v2919_v1 = vrot.slane %v2891_v53, %v5871_v17  ;;  %v1766_v8 = vrot.slane %v5992_v38, %v5857_v9  ;;  %v1770_v15 = vrot.slane %v5992_v38, %v5860_v10 }
 0x37a   :  { %v2920_v18 = vcombine.low %v2898_v56, %v2905_v58  ;;  %v1774_v31 = vrot.slane %v5992_v38, %v5863_v11  ;;  %v1778_v23 = vrot.slane %v5992_v38, %v5866_v13  ;;  %v3231_v24 = vcombine.low %v1750_v54, %v1754_v57 }
 0x37b   :  { %4646 = vperm.xlu0 %5294, %v3377_v43   ;;  %v2921_v52 = vcombine.low %v2912_v20, %v2919_v1  ;;  %v3232_v29 = vcombine.low %v1758_v59, %v1762_v62  ;;  %v3233_v30 = vcombine.low %v1766_v8, %v1770_v15  ;;  %v6164_v40 = vadd.f32 %v5845_v51, %v1215_v63  ;;  %v1233_v8 = vpop.xlane.xlu0 %1232 }
 0x37c   :  { %v2928_v22 = vrot.slane %v2920_v18, %v5871_v17  ;;  %v3234_v7 = vcombine.low %v1774_v31, %v1778_v23  ;;  %v3241_v32 = vrot.slane %v3231_v24, %v5871_v17  ;;  %v6169_v33 = vadd.f32 %v5845_v51, %v1218_v16  ;;  %v1236_v23 = vpop.xlane.xlu1 %1235 }
 0x37d   :  { %v2935_v34 = vrot.slane %v2921_v52, %v5871_v17  ;;  %v3248_v38 = vrot.slane %v3232_v29, %v5871_v17  ;;  %v3255_v27 = vrot.slane %v3233_v30, %v5871_v17  ;;  %v1718_v36 = vrot.slane %v5935_v35, %v5842_v0 }
 0x37e   :  { %v3262_v37 = vrot.slane %v3234_v7, %v5871_v17  ;;  %v1722_v39 = vrot.slane %v5935_v35, %v5848_v3  ;;  %v1726_v41 = vrot.slane %v5935_v35, %v5851_v5  ;;  %v1730_v42 = vrot.slane %v5935_v35, %v5854_v6 }
 0x37f   :  { %v2936_v48 = vcombine.low %v2928_v22, %v2935_v34  ;;  %v3263_v44 = vcombine.low %v3241_v32, %v3248_v38  ;;  %v1734_v47 = vrot.slane %v5935_v35, %v5857_v9  ;;  %v1738_v49 = vrot.slane %v5935_v35, %v5860_v10 }
 0x380   :  { %v3264_v50 = vcombine.low %v3255_v27, %v3262_v37  ;;  %v1742_v14 = vrot.slane %v5935_v35, %v5863_v11  ;;  %v1746_v4 = vrot.slane %v5935_v35, %v5866_v13  ;;  %v3182_v54 = vcombine.low %v1718_v36, %v1722_v39 }
 0x381   :  { %4619 = vperm.xlu1 %5295, %v2936_v48   ;;  %v3271_v55 = vrot.slane %v3263_v44, %v5871_v17  ;;  %v3183_v53 = vcombine.low %v1726_v41, %v1730_v42  ;;  %v3184_v56 = vcombine.low %v1734_v47, %v1738_v49  ;;  %v1942_v57 = vrot.slane %v6015_v2, %v5842_v0 }
 0x382   :  { %v3278_v58 = vrot.slane %v3264_v50, %v5871_v17  ;;  %v3185_v20 = vcombine.low %v1742_v14, %v1746_v4  ;;  %v3192_v59 = vrot.slane %v3182_v54, %v5871_v17  ;;  %v1946_v62 = vrot.slane %v6015_v2, %v5848_v3 }
 0x383   :  { %v3199_v63 = vrot.slane %v3183_v53, %v5871_v17  ;;  %v3206_v35 = vrot.slane %v3184_v56, %v5871_v17  ;;  %v1950_v43 = vrot.slane %v6015_v2, %v5851_v5  ;;  %v1954_v1 = vrot.slane %v6015_v2, %v5854_v6 }
 0x384   :  { %v3279_v15 = vcombine.low %v3271_v55, %v3278_v58  ;;  %v3213_v16 = vrot.slane %v3185_v20, %v5871_v17  ;;  %v1958_v18 = vrot.slane %v6015_v2, %v5857_v9  ;;  %v1962_v31 = vrot.slane %v6015_v2, %v5860_v10 }
 0x385   :  { %v3214_v24 = vcombine.low %v3192_v59, %v3199_v63  ;;  %v1966_v52 = vrot.slane %v6015_v2, %v5863_v11  ;;  %v1970_v29 = vrot.slane %v6015_v2, %v5866_v13  ;;  %v3525_v30 = vcombine.low %v1942_v57, %v1946_v62 }
 0x386   :  { %4640 = vperm.xlu0 %5294, %v3279_v15   ;;  %v3215_v22 = vcombine.low %v3206_v35, %v3213_v16  ;;  %v3526_v7 = vcombine.low %v1950_v43, %v1954_v1  ;;  %v3527_v32 = vcombine.low %v1958_v18, %v1962_v31  ;;  %v6214_v34 = vadd.f32 %v5845_v51, %v1233_v8  ;;  %v1227_v18 = vpop.xlane.xlu0 %1226 }
 0x387   :  { %v3222_v38 = vrot.slane %v3214_v24, %v5871_v17  ;;  %v3528_v27 = vcombine.low %v1966_v52, %v1970_v29  ;;  %v3535_v36 = vrot.slane %v3525_v30, %v5871_v17  ;;  %v6219_v37 = vadd.f32 %v5845_v51, %v1236_v23  ;;  %v1230_v29 = vpop.xlane.xlu1 %1229 }
 0x388   :  { %v3229_v39 = vrot.slane %v3215_v22, %v5871_v17  ;;  %v3542_v2 = vrot.slane %v3526_v7, %v5871_v17  ;;  %v3549_v41 = vrot.slane %v3527_v32, %v5871_v17  ;;  %v1654_v42 = vrot.slane %v5956_v46, %v5842_v0 }
 0x389   :  { %v3556_v48 = vrot.slane %v3528_v27, %v5871_v17  ;;  %v1658_v44 = vrot.slane %v5956_v46, %v5848_v3  ;;  %v1662_v47 = vrot.slane %v5956_v46, %v5851_v5  ;;  %v1666_v49 = vrot.slane %v5956_v46, %v5854_v6 }
 0x38a   :  { %v3230_v50 = vcombine.low %v3222_v38, %v3229_v39  ;;  %v3557_v14 = vcombine.low %v3535_v36, %v3542_v2  ;;  %v1670_v4 = vrot.slane %v5956_v46, %v5857_v9  ;;  %v1674_v54 = vrot.slane %v5956_v46, %v5860_v10 }
 0x38b   :  { %v3558_v55 = vcombine.low %v3549_v41, %v3556_v48  ;;  %v1678_v53 = vrot.slane %v5956_v46, %v5863_v11  ;;  %v1682_v56 = vrot.slane %v5956_v46, %v5866_v13  ;;  %v3084_v57 = vcombine.low %v1654_v42, %v1658_v44 }
 0x38c   :  { %4637 = vperm.xlu1 %5295, %v3230_v50   ;;  %v3565_v58 = vrot.slane %v3557_v14, %v5871_v17  ;;  %v3085_v20 = vcombine.low %v1662_v47, %v1666_v49  ;;  %v3086_v59 = vcombine.low %v1670_v4, %v1674_v54  ;;  %v1878_v62 = vrot.slane %v6064_v21, %v5842_v0 }
 0x38d   :  { %v3572_v63 = vrot.slane %v3558_v55, %v5871_v17  ;;  %v3087_v35 = vcombine.low %v1678_v53, %v1682_v56  ;;  %v3094_v43 = vrot.slane %v3084_v57, %v5871_v17  ;;  %v1882_v1 = vrot.slane %v6064_v21, %v5848_v3 }
 0x38e   :  { %v3101_v8 = vrot.slane %v3085_v20, %v5871_v17  ;;  %v3108_v46 = vrot.slane %v3086_v59, %v5871_v17  ;;  %v1886_v15 = vrot.slane %v6064_v21, %v5851_v5  ;;  %v1890_v16 = vrot.slane %v6064_v21, %v5854_v6 }
 0x38f   :  { %v3573_v31 = vcombine.low %v3565_v58, %v3572_v63  ;;  %v3115_v23 = vrot.slane %v3087_v35, %v5871_v17  ;;  %v1894_v24 = vrot.slane %v6064_v21, %v5857_v9  ;;  %v1898_v52 = vrot.slane %v6064_v21, %v5860_v10 }
 0x390   :  { %v3116_v30 = vcombine.low %v3094_v43, %v3101_v8  ;;  %v1902_v22 = vrot.slane %v6064_v21, %v5863_v11  ;;  %v1906_v7 = vrot.slane %v6064_v21, %v5866_v13  ;;  %v3427_v32 = vcombine.low %v1878_v62, %v1882_v1 }
 0x391   :  { %4658 = vperm.xlu0 %5294, %v3573_v31   ;;  %v3117_v38 = vcombine.low %v3108_v46, %v3115_v23  ;;  %v3428_v27 = vcombine.low %v1886_v15, %v1890_v16  ;;  %v3429_v36 = vcombine.low %v1894_v24, %v1898_v52  ;;  %v6264_v39 = vadd.f32 %v5845_v51, %v1227_v18  ;;  %v1245_v24 = vpop.xlane.xlu0 %1244 }
 0x392   :  { %v3124_v2 = vrot.slane %v3116_v30, %v5871_v17  ;;  %v3430_v41 = vcombine.low %v1902_v22, %v1906_v7  ;;  %v3437_v42 = vrot.slane %v3427_v32, %v5871_v17  ;;  %v6269_v48 = vadd.f32 %v5845_v51, %v1230_v29  ;;  %v1248_v7 = vpop.xlane.xlu1 %1247 }
 0x393   :  { %v3131_v44 = vrot.slane %v3117_v38, %v5871_v17  ;;  %v3444_v21 = vrot.slane %v3428_v27, %v5871_v17  ;;  %v3451_v47 = vrot.slane %v3429_v36, %v5871_v17  ;;  %v1846_v49 = vrot.slane %v5977_v26, %v5842_v0 }
 0x394   :  { %v3458_v50 = vrot.slane %v3430_v41, %v5871_v17  ;;  %v1850_v14 = vrot.slane %v5977_v26, %v5848_v3  ;;  %v1854_v4 = vrot.slane %v5977_v26, %v5851_v5  ;;  %v1858_v54 = vrot.slane %v5977_v26, %v5854_v6 }
 0x395   :  { %v3132_v55 = vcombine.low %v3124_v2, %v3131_v44  ;;  %v3459_v53 = vcombine.low %v3437_v42, %v3444_v21  ;;  %v1862_v56 = vrot.slane %v5977_v26, %v5857_v9  ;;  %v1866_v57 = vrot.slane %v5977_v26, %v5860_v10 }
 0x396   :  { %v3460_v58 = vcombine.low %v3451_v47, %v3458_v50  ;;  %v1870_v20 = vrot.slane %v5977_v26, %v5863_v11  ;;  %v1874_v59 = vrot.slane %v5977_v26, %v5866_v13  ;;  %v3378_v62 = vcombine.low %v1846_v49, %v1850_v14 }
 0x397   :  { %4631 = vperm.xlu1 %5295, %v3132_v55   ;;  %v3467_v63 = vrot.slane %v3459_v53, %v5871_v17  ;;  %v3379_v35 = vcombine.low %v1854_v4, %v1858_v54  ;;  %v3380_v43 = vcombine.low %v1862_v56, %v1866_v57  ;;  %v2070_v1 = vrot.slane %v6114_v28, %v5842_v0 }
 0x398   :  { %v3474_v8 = vrot.slane %v3460_v58, %v5871_v17  ;;  %v3381_v46 = vcombine.low %v1870_v20, %v1874_v59  ;;  %v3388_v15 = vrot.slane %v3378_v62, %v5871_v17  ;;  %v2074_v16 = vrot.slane %v6114_v28, %v5848_v3 }
 0x399   :  { %v3395_v18 = vrot.slane %v3379_v35, %v5871_v17  ;;  %v3402_v26 = vrot.slane %v3380_v43, %v5871_v17  ;;  %v2078_v31 = vrot.slane %v6114_v28, %v5851_v5  ;;  %v2082_v23 = vrot.slane %v6114_v28, %v5854_v6 }
 0x39a   :  { %v3475_v52 = vcombine.low %v3467_v63, %v3474_v8  ;;  %v3409_v29 = vrot.slane %v3381_v46, %v5871_v17  ;;  %v2086_v30 = vrot.slane %v6114_v28, %v5857_v9  ;;  %v2090_v22 = vrot.slane %v6114_v28, %v5860_v10 }
 0x39b   :  { %v3410_v32 = vcombine.low %v3388_v15, %v3395_v18  ;;  %v2094_v38 = vrot.slane %v6114_v28, %v5863_v11  ;;  %v2098_v27 = vrot.slane %v6114_v28, %v5866_v13  ;;  %v3721_v36 = vcombine.low %v2070_v1, %v2074_v16 }
 0x39c   :  { %4652 = vperm.xlu0 %5294, %v3475_v52   ;;  %v3411_v2 = vcombine.low %v3402_v26, %v3409_v29  ;;  %v3722_v41 = vcombine.low %v2078_v31, %v2082_v23  ;;  %v3723_v42 = vcombine.low %v2086_v30, %v2090_v22  ;;  %v6314_v44 = vadd.f32 %v5845_v51, %v1245_v24  ;;  %v1239_v30 = vpop.xlane.xlu0 %1238 }
 0x39d   :  { %v3418_v21 = vrot.slane %v3410_v32, %v5871_v17  ;;  %v3724_v47 = vcombine.low %v2094_v38, %v2098_v27  ;;  %v3731_v49 = vrot.slane %v3721_v36, %v5871_v17  ;;  %v6319_v50 = vadd.f32 %v5845_v51, %v1248_v7  ;;  %v1242_v27 = vpop.xlane.xlu1 %1241 }
 0x39e   :  { %v3425_v14 = vrot.slane %v3411_v2, %v5871_v17  ;;  %v3738_v28 = vrot.slane %v3722_v41, %v5871_v17  ;;  %v3745_v4 = vrot.slane %v3723_v42, %v5871_v17  ;;  %v1782_v54 = vrot.slane %v5997_v45, %v5842_v0 }
 0x39f   :  { %v3752_v55 = vrot.slane %v3724_v47, %v5871_v17  ;;  %v1786_v53 = vrot.slane %v5997_v45, %v5848_v3  ;;  %v1790_v56 = vrot.slane %v5997_v45, %v5851_v5  ;;  %v1794_v57 = vrot.slane %v5997_v45, %v5854_v6 }
 0x3a0   :  { %v3426_v58 = vcombine.low %v3418_v21, %v3425_v14  ;;  %v3753_v20 = vcombine.low %v3731_v49, %v3738_v28  ;;  %v1798_v59 = vrot.slane %v5997_v45, %v5857_v9  ;;  %v1802_v62 = vrot.slane %v5997_v45, %v5860_v10 }
 0x3a1   :  { %v3754_v63 = vcombine.low %v3745_v4, %v3752_v55  ;;  %v1806_v35 = vrot.slane %v5997_v45, %v5863_v11  ;;  %v1810_v43 = vrot.slane %v5997_v45, %v5866_v13  ;;  %v3280_v1 = vcombine.low %v1782_v54, %v1786_v53 }
 0x3a2   :  { %4649 = vperm.xlu1 %5295, %v3426_v58   ;;  %v3761_v8 = vrot.slane %v3753_v20, %v5871_v17  ;;  %v3281_v46 = vcombine.low %v1790_v56, %v1794_v57  ;;  %v3282_v15 = vcombine.low %v1798_v59, %v1802_v62  ;;  %v2006_v16 = vrot.slane %v6164_v40, %v5842_v0 }
 0x3a3   :  { %v3768_v18 = vrot.slane %v3754_v63, %v5871_v17  ;;  %v3283_v26 = vcombine.low %v1806_v35, %v1810_v43  ;;  %v3290_v31 = vrot.slane %v3280_v1, %v5871_v17  ;;  %v2010_v23 = vrot.slane %v6164_v40, %v5848_v3 }
 0x3a4   :  { %v3297_v24 = vrot.slane %v3281_v46, %v5871_v17  ;;  %v3304_v45 = vrot.slane %v3282_v15, %v5871_v17  ;;  %v2014_v52 = vrot.slane %v6164_v40, %v5851_v5  ;;  %v2018_v29 = vrot.slane %v6164_v40, %v5854_v6 }
 0x3a5   :  { %v3769_v22 = vcombine.low %v3761_v8, %v3768_v18  ;;  %v3311_v7 = vrot.slane %v3283_v26, %v5871_v17  ;;  %v2022_v32 = vrot.slane %v6164_v40, %v5857_v9  ;;  %v2026_v38 = vrot.slane %v6164_v40, %v5860_v10 }
 0x3a6   :  { %v3312_v36 = vcombine.low %v3290_v31, %v3297_v24  ;;  %v2030_v2 = vrot.slane %v6164_v40, %v5863_v11  ;;  %v2034_v41 = vrot.slane %v6164_v40, %v5866_v13  ;;  %v3623_v42 = vcombine.low %v2006_v16, %v2010_v23 }
 0x3a7   :  { %4670 = vperm.xlu0 %5294, %v3769_v22   ;;  %v3313_v21 = vcombine.low %v3304_v45, %v3311_v7  ;;  %v3624_v47 = vcombine.low %v2014_v52, %v2018_v29  ;;  %v3625_v49 = vcombine.low %v2022_v32, %v2026_v38  ;;  %v6364_v14 = vadd.f32 %v5845_v51, %v1239_v30  ;;  %v1257_v32 = vpop.xlane.xlu0 %1256 }
 0x3a8   :  { %v3320_v28 = vrot.slane %v3312_v36, %v5871_v17  ;;  %v3626_v4 = vcombine.low %v2030_v2, %v2034_v41  ;;  %v3633_v54 = vrot.slane %v3623_v42, %v5871_v17  ;;  %v6369_v55 = vadd.f32 %v5845_v51, %v1242_v27  ;;  %v1260_v41 = vpop.xlane.xlu1 %1259 }
 0x3a9   :  { %v3327_v53 = vrot.slane %v3313_v21, %v5871_v17  ;;  %v3640_v40 = vrot.slane %v3624_v47, %v5871_v17  ;;  %v3647_v56 = vrot.slane %v3625_v49, %v5871_v17  ;;  %v1974_v57 = vrot.slane %v6019_v19, %v5842_v0 }
 0x3aa   :  { %v3654_v58 = vrot.slane %v3626_v4, %v5871_v17  ;;  %v1978_v20 = vrot.slane %v6019_v19, %v5848_v3  ;;  %v1982_v59 = vrot.slane %v6019_v19, %v5851_v5  ;;  %v1986_v62 = vrot.slane %v6019_v19, %v5854_v6 }
 0x3ab   :  { %v3328_v63 = vcombine.low %v3320_v28, %v3327_v53  ;;  %v3655_v35 = vcombine.low %v3633_v54, %v3640_v40  ;;  %v1990_v43 = vrot.slane %v6019_v19, %v5857_v9  ;;  %v1994_v1 = vrot.slane %v6019_v19, %v5860_v10 }
 0x3ac   :  { %v3656_v8 = vcombine.low %v3647_v56, %v3654_v58  ;;  %v1998_v46 = vrot.slane %v6019_v19, %v5863_v11  ;;  %v2002_v15 = vrot.slane %v6019_v19, %v5866_v13  ;;  %v3574_v16 = vcombine.low %v1974_v57, %v1978_v20 }
 0x3ad   :  { %4643 = vperm.xlu1 %5295, %v3328_v63   ;;  %v3663_v18 = vrot.slane %v3655_v35, %v5871_v17  ;;  %v3575_v26 = vcombine.low %v1982_v59, %v1986_v62  ;;  %v3576_v31 = vcombine.low %v1990_v43, %v1994_v1  ;;  %v2198_v23 = vrot.slane %v6214_v34, %v5842_v0 }
 0x3ae   :  { %v3670_v24 = vrot.slane %v3656_v8, %v5871_v17  ;;  %v3577_v45 = vcombine.low %v1998_v46, %v2002_v15  ;;  %v3584_v52 = vrot.slane %v3574_v16, %v5871_v17  ;;  %v2202_v29 = vrot.slane %v6214_v34, %v5848_v3 }
 0x3af   :  { %v3591_v30 = vrot.slane %v3575_v26, %v5871_v17  ;;  %v3598_v19 = vrot.slane %v3576_v31, %v5871_v17  ;;  %v2206_v22 = vrot.slane %v6214_v34, %v5851_v5  ;;  %v2210_v7 = vrot.slane %v6214_v34, %v5854_v6 }
 0x3b0   :  { %v3671_v38 = vcombine.low %v3663_v18, %v3670_v24  ;;  %v3605_v27 = vrot.slane %v3577_v45, %v5871_v17  ;;  %v2214_v36 = vrot.slane %v6214_v34, %v5857_v9  ;;  %v2218_v2 = vrot.slane %v6214_v34, %v5860_v10 }
 0x3b1   :  { %v3606_v42 = vcombine.low %v3584_v52, %v3591_v30  ;;  %v2222_v21 = vrot.slane %v6214_v34, %v5863_v11  ;;  %v2226_v47 = vrot.slane %v6214_v34, %v5866_v13  ;;  %v3917_v49 = vcombine.low %v2198_v23, %v2202_v29 }
 0x3b2   :  { %4664 = vperm.xlu0 %5294, %v3671_v38   ;;  %v3607_v28 = vcombine.low %v3598_v19, %v3605_v27  ;;  %v3918_v4 = vcombine.low %v2206_v22, %v2210_v7  ;;  %v3919_v54 = vcombine.low %v2214_v36, %v2218_v2  ;;  %v6414_v53 = vadd.f32 %v5845_v51, %v1257_v32  ;;  %v1251_v36 = vpop.xlane.xlu0 %1250 }
 0x3b3   :  { %v3614_v40 = vrot.slane %v3606_v42, %v5871_v17  ;;  %v3920_v56 = vcombine.low %v2222_v21, %v2226_v47  ;;  %v3927_v57 = vrot.slane %v3917_v49, %v5871_v17  ;;  %v6419_v58 = vadd.f32 %v5845_v51, %v1260_v41  ;;  %v1254_v47 = vpop.xlane.xlu1 %1253 }
 0x3b4   :  { %v3621_v20 = vrot.slane %v3607_v28, %v5871_v17  ;;  %v3934_v34 = vrot.slane %v3918_v4, %v5871_v17  ;;  %v3941_v59 = vrot.slane %v3919_v54, %v5871_v17  ;;  %v1910_v62 = vrot.slane %v6069_v25, %v5842_v0 }
 0x3b5   :  { %v3948_v63 = vrot.slane %v3920_v56, %v5871_v17  ;;  %v1914_v35 = vrot.slane %v6069_v25, %v5848_v3  ;;  %v1918_v43 = vrot.slane %v6069_v25, %v5851_v5  ;;  %v1922_v1 = vrot.slane %v6069_v25, %v5854_v6 }
 0x3b6   :  { %v3622_v8 = vcombine.low %v3614_v40, %v3621_v20  ;;  %v3949_v46 = vcombine.low %v3927_v57, %v3934_v34  ;;  %v1926_v15 = vrot.slane %v6069_v25, %v5857_v9  ;;  %v1930_v16 = vrot.slane %v6069_v25, %v5860_v10 }
 0x3b7   :  { %v3950_v18 = vcombine.low %v3941_v59, %v3948_v63  ;;  %v1934_v26 = vrot.slane %v6069_v25, %v5863_v11  ;;  %v1938_v31 = vrot.slane %v6069_v25, %v5866_v13  ;;  %v3476_v23 = vcombine.low %v1910_v62, %v1914_v35 }
 0x3b8   :  { %4661 = vperm.xlu1 %5295, %v3622_v8   ;;  %v3957_v24 = vrot.slane %v3949_v46, %v5871_v17  ;;  %v3477_v45 = vcombine.low %v1918_v43, %v1922_v1  ;;  %v3478_v52 = vcombine.low %v1926_v15, %v1930_v16  ;;  %v2134_v29 = vrot.slane %v6264_v39, %v5842_v0 }
 0x3b9   :  { %v3964_v30 = vrot.slane %v3950_v18, %v5871_v17  ;;  %v3479_v19 = vcombine.low %v1934_v26, %v1938_v31  ;;  %v3486_v22 = vrot.slane %v3476_v23, %v5871_v17  ;;  %v2138_v7 = vrot.slane %v6264_v39, %v5848_v3 }
 0x3ba   :  { %v3493_v32 = vrot.slane %v3477_v45, %v5871_v17  ;;  %v3500_v25 = vrot.slane %v3478_v52, %v5871_v17  ;;  %v2142_v38 = vrot.slane %v6264_v39, %v5851_v5  ;;  %v2146_v27 = vrot.slane %v6264_v39, %v5854_v6 }
 0x3bb   :  { %v3965_v2 = vcombine.low %v3957_v24, %v3964_v30  ;;  %v3507_v41 = vrot.slane %v3479_v19, %v5871_v17  ;;  %v2150_v42 = vrot.slane %v6264_v39, %v5857_v9  ;;  %v2154_v21 = vrot.slane %v6264_v39, %v5860_v10 }
 0x3bc   :  { %v3508_v49 = vcombine.low %v3486_v22, %v3493_v32  ;;  %v2158_v28 = vrot.slane %v6264_v39, %v5863_v11  ;;  %v2162_v4 = vrot.slane %v6264_v39, %v5866_v13  ;;  %v3819_v54 = vcombine.low %v2134_v29, %v2138_v7 }
 0x3bd   :  { %4682 = vperm.xlu0 %5294, %v3965_v2   ;;  %v3509_v40 = vcombine.low %v3500_v25, %v3507_v41  ;;  %v3820_v56 = vcombine.low %v2142_v38, %v2146_v27  ;;  %v3821_v57 = vcombine.low %v2150_v42, %v2154_v21  ;;  %v6464_v20 = vadd.f32 %v5845_v51, %v1251_v36  ;;  %v1269_v42 = vpop.xlane.xlu0 %1268 }
 0x3be   :  { %v3516_v34 = vrot.slane %v3508_v49, %v5871_v17  ;;  %v3822_v59 = vcombine.low %v2158_v28, %v2162_v4  ;;  %v3829_v62 = vrot.slane %v3819_v54, %v5871_v17  ;;  %v6469_v63 = vadd.f32 %v5845_v51, %v1254_v47  ;;  %v1272_v4 = vpop.xlane.xlu1 %1271 }
 0x3bf   :  { %v3523_v35 = vrot.slane %v3509_v40, %v5871_v17  ;;  %v3836_v39 = vrot.slane %v3820_v56, %v5871_v17  ;;  %v3843_v43 = vrot.slane %v3821_v57, %v5871_v17  ;;  %v2102_v1 = vrot.slane %v6119_v12, %v5842_v0 }
 0x3c0   :  { %v3850_v8 = vrot.slane %v3822_v59, %v5871_v17  ;;  %v2106_v46 = vrot.slane %v6119_v12, %v5848_v3  ;;  %v2110_v15 = vrot.slane %v6119_v12, %v5851_v5  ;;  %v2114_v16 = vrot.slane %v6119_v12, %v5854_v6 }
 0x3c1   :  { %v3524_v18 = vcombine.low %v3516_v34, %v3523_v35  ;;  %v3851_v26 = vcombine.low %v3829_v62, %v3836_v39  ;;  %v2118_v31 = vrot.slane %v6119_v12, %v5857_v9  ;;  %v2122_v23 = vrot.slane %v6119_v12, %v5860_v10 }
 0x3c2   :  { %v3852_v24 = vcombine.low %v3843_v43, %v3850_v8  ;;  %v2126_v45 = vrot.slane %v6119_v12, %v5863_v11  ;;  %v2130_v52 = vrot.slane %v6119_v12, %v5866_v13  ;;  %v3770_v29 = vcombine.low %v2102_v1, %v2106_v46 }
 0x3c3   :  { %4655 = vperm.xlu1 %5295, %v3524_v18   ;;  %v3859_v30 = vrot.slane %v3851_v26, %v5871_v17  ;;  %v3771_v19 = vcombine.low %v2110_v15, %v2114_v16  ;;  %v3772_v22 = vcombine.low %v2118_v31, %v2122_v23  ;;  %v2326_v7 = vrot.slane %v6314_v44, %v5842_v0 }
 0x3c4   :  { %v3866_v32 = vrot.slane %v3852_v24, %v5871_v17  ;;  %v3773_v25 = vcombine.low %v2126_v45, %v2130_v52  ;;  %v3780_v38 = vrot.slane %v3770_v29, %v5871_v17  ;;  %v2330_v27 = vrot.slane %v6314_v44, %v5848_v3 }
 0x3c5   :  { %v3787_v36 = vrot.slane %v3771_v19, %v5871_v17  ;;  %v3794_v12 = vrot.slane %v3772_v22, %v5871_v17  ;;  %v2334_v2 = vrot.slane %v6314_v44, %v5851_v5  ;;  %v2338_v41 = vrot.slane %v6314_v44, %v5854_v6 }
 0x3c6   :  { %v3867_v21 = vcombine.low %v3859_v30, %v3866_v32  ;;  %v3801_v47 = vrot.slane %v3773_v25, %v5871_v17  ;;  %v2342_v49 = vrot.slane %v6314_v44, %v5857_v9  ;;  %v2346_v28 = vrot.slane %v6314_v44, %v5860_v10 }
 0x3c7   :  { %v3802_v54 = vcombine.low %v3780_v38, %v3787_v36  ;;  %v2350_v40 = vrot.slane %v6314_v44, %v5863_v11  ;;  %v2354_v56 = vrot.slane %v6314_v44, %v5866_v13  ;;  %v4113_v57 = vcombine.low %v2326_v7, %v2330_v27 }
 0x3c8   :  { %4676 = vperm.xlu0 %5294, %v3867_v21   ;;  %v3803_v34 = vcombine.low %v3794_v12, %v3801_v47  ;;  %v4114_v59 = vcombine.low %v2334_v2, %v2338_v41  ;;  %v4115_v62 = vcombine.low %v2342_v49, %v2346_v28  ;;  %v6514_v35 = vadd.f32 %v5845_v51, %v1269_v42  ;;  %v1263_v49 = vpop.xlane.xlu0 %1262 }
 0x3c9   :  { %v3810_v39 = vrot.slane %v3802_v54, %v5871_v17  ;;  %v4116_v43 = vcombine.low %v2350_v40, %v2354_v56  ;;  %v4123_v1 = vrot.slane %v4113_v57, %v5871_v17  ;;  %v6519_v8 = vadd.f32 %v5845_v51, %v1272_v4  ;;  %v1266_v56 = vpop.xlane.xlu1 %1265 }
 0x3ca   :  { %v3817_v46 = vrot.slane %v3803_v34, %v5871_v17  ;;  %v4130_v44 = vrot.slane %v4114_v59, %v5871_v17  ;;  %v4137_v15 = vrot.slane %v4115_v62, %v5871_v17  ;;  %v2038_v16 = vrot.slane %v6169_v33, %v5842_v0 }
 0x3cb   :  { %v4144_v18 = vrot.slane %v4116_v43, %v5871_v17  ;;  %v2042_v26 = vrot.slane %v6169_v33, %v5848_v3  ;;  %v2046_v31 = vrot.slane %v6169_v33, %v5851_v5  ;;  %v2050_v23 = vrot.slane %v6169_v33, %v5854_v6 }
 0x3cc   :  { %v3818_v24 = vcombine.low %v3810_v39, %v3817_v46  ;;  %v4145_v45 = vcombine.low %v4123_v1, %v4130_v44  ;;  %v2054_v52 = vrot.slane %v6169_v33, %v5857_v9  ;;  %v2058_v29 = vrot.slane %v6169_v33, %v5860_v10 }
 0x3cd   :  { %v4146_v30 = vcombine.low %v4137_v15, %v4144_v18  ;;  %v2062_v19 = vrot.slane %v6169_v33, %v5863_v11  ;;  %v2066_v22 = vrot.slane %v6169_v33, %v5866_v13  ;;  %v3672_v7 = vcombine.low %v2038_v16, %v2042_v26 }
 0x3ce   :  { %4673 = vperm.xlu1 %5295, %v3818_v24   ;;  %v4153_v32 = vrot.slane %v4145_v45, %v5871_v17  ;;  %v3673_v25 = vcombine.low %v2046_v31, %v2050_v23  ;;  %v3674_v38 = vcombine.low %v2054_v52, %v2058_v29  ;;  %v2262_v27 = vrot.slane %v6364_v14, %v5842_v0 }
 0x3cf   :  { %v4160_v36 = vrot.slane %v4146_v30, %v5871_v17  ;;  %v3675_v12 = vcombine.low %v2062_v19, %v2066_v22  ;;  %v3682_v2 = vrot.slane %v3672_v7, %v5871_v17  ;;  %v2266_v41 = vrot.slane %v6364_v14, %v5848_v3 }
 0x3d0   :  { %v3689_v42 = vrot.slane %v3673_v25, %v5871_v17  ;;  %v3696_v33 = vrot.slane %v3674_v38, %v5871_v17  ;;  %v2270_v21 = vrot.slane %v6364_v14, %v5851_v5  ;;  %v2274_v47 = vrot.slane %v6364_v14, %v5854_v6 }
 0x3d1   :  { %v4161_v28 = vcombine.low %v4153_v32, %v4160_v36  ;;  %v3703_v4 = vrot.slane %v3675_v12, %v5871_v17  ;;  %v2278_v54 = vrot.slane %v6364_v14, %v5857_v9  ;;  %v2282_v40 = vrot.slane %v6364_v14, %v5860_v10 }
 0x3d2   :  { %v3704_v57 = vcombine.low %v3682_v2, %v3689_v42  ;;  %v2286_v34 = vrot.slane %v6364_v14, %v5863_v11  ;;  %v2290_v59 = vrot.slane %v6364_v14, %v5866_v13  ;;  %v4015_v62 = vcombine.low %v2262_v27, %v2266_v41 }
 0x3d3   :  { %4694 = vperm.xlu0 %5294, %v4161_v28   ;;  %v3705_v39 = vcombine.low %v3696_v33, %v3703_v4  ;;  %v4016_v43 = vcombine.low %v2270_v21, %v2274_v47  ;;  %v4017_v1 = vcombine.low %v2278_v54, %v2282_v40  ;;  %v6564_v46 = vadd.f32 %v5845_v51, %v1263_v49 }
 0x3d4   :  { %v3712_v44 = vrot.slane %v3704_v57, %v5871_v17  ;;  %v4018_v15 = vcombine.low %v2286_v34, %v2290_v59  ;;  %v4025_v16 = vrot.slane %v4015_v62, %v5871_v17  ;;  %v6569_v18 = vadd.f32 %v5845_v51, %v1266_v56 }
 0x3d5   :  { %v3719_v26 = vrot.slane %v3705_v39, %v5871_v17  ;;  %v4032_v14 = vrot.slane %v4016_v43, %v5871_v17  ;;  %v4039_v31 = vrot.slane %v4017_v1, %v5871_v17  ;;  %v2230_v23 = vrot.slane %v6219_v37, %v5842_v0 }
 0x3d6   :  { %v4046_v24 = vrot.slane %v4018_v15, %v5871_v17  ;;  %v2234_v45 = vrot.slane %v6219_v37, %v5848_v3  ;;  %v2238_v52 = vrot.slane %v6219_v37, %v5851_v5  ;;  %v2242_v51 = vrot.slane %v6219_v37, %v5854_v6 }
 0x3d7   :  { %v3720_v29 = vcombine.low %v3712_v44, %v3719_v26  ;;  %v4047_v30 = vcombine.low %v4025_v16, %v4032_v14  ;;  %v2246_v19 = vrot.slane %v6219_v37, %v5857_v9  ;;  %v2250_v22 = vrot.slane %v6219_v37, %v5860_v10 }
 0x3d8   :  { %v4048_v7 = vcombine.low %v4039_v31, %v4046_v24  ;;  %v2254_v32 = vrot.slane %v6219_v37, %v5863_v11  ;;  %v2258_v25 = vrot.slane %v6219_v37, %v5866_v13  ;;  %v3966_v38 = vcombine.low %v2230_v23, %v2234_v45 }
 0x3d9   :  { %4667 = vperm.xlu1 %5295, %v3720_v29   ;;  %v4055_v27 = vrot.slane %v4047_v30, %v5871_v17  ;;  %v3967_v36 = vcombine.low %v2238_v52, %v2242_v51  ;;  %v3968_v12 = vcombine.low %v2246_v19, %v2250_v22  ;;  %v2294_v2 = vrot.slane %v6369_v55, %v5842_v0 }
 0x3da   :  { %v4062_v41 = vrot.slane %v4048_v7, %v5871_v17  ;;  %v3969_v42 = vcombine.low %v2254_v32, %v2258_v25  ;;  %v3976_v33 = vrot.slane %v3966_v38, %v5871_v17  ;;  %v2298_v21 = vrot.slane %v6369_v55, %v5848_v3 }
 0x3db   :  { %v3983_v47 = vrot.slane %v3967_v36, %v5871_v17  ;;  %v3990_v37 = vrot.slane %v3968_v12, %v5871_v17  ;;  %v2302_v49 = vrot.slane %v6369_v55, %v5851_v5  ;;  %v2306_v28 = vrot.slane %v6369_v55, %v5854_v6 }
 0x3dc   :  { %v4063_v4 = vcombine.low %v4055_v27, %v4062_v41  ;;  %v3997_v54 = vrot.slane %v3969_v42, %v5871_v17  ;;  %v2310_v40 = vrot.slane %v6369_v55, %v5857_v9  ;;  %v2314_v56 = vrot.slane %v6369_v55, %v5860_v10 }
 0x3dd   :  { %v3998_v57 = vcombine.low %v3976_v33, %v3983_v47  ;;  %v2318_v34 = vrot.slane %v6369_v55, %v5863_v11  ;;  %v2322_v59 = vrot.slane %v6369_v55, %v5866_v13  ;;  %v4064_v62 = vcombine.low %v2294_v2, %v2298_v21 }
 0x3de   :  { %4688 = vperm.xlu0 %5294, %v4063_v4   ;;  %v3999_v39 = vcombine.low %v3990_v37, %v3997_v54  ;;  %v4065_v43 = vcombine.low %v2302_v49, %v2306_v28  ;;  %v4066_v1 = vcombine.low %v2310_v40, %v2314_v56  ;;  %v2166_v44 = vrot.slane %v6269_v48, %v5842_v0 }
 0x3df   :  { %v4006_v15 = vrot.slane %v3998_v57, %v5871_v17  ;;  %v4067_v16 = vcombine.low %v2318_v34, %v2322_v59  ;;  %v4074_v26 = vrot.slane %v4064_v62, %v5871_v17  ;;  %v2170_v14 = vrot.slane %v6269_v48, %v5848_v3 }
 0x3e0   :  { %v4013_v31 = vrot.slane %v3999_v39, %v5871_v17  ;;  %v4081_v55 = vrot.slane %v4065_v43, %v5871_v17  ;;  %v4088_v23 = vrot.slane %v4066_v1, %v5871_v17  ;;  %v2174_v24 = vrot.slane %v6269_v48, %v5851_v5 }
 0x3e1   :  { %v4095_v45 = vrot.slane %v4067_v16, %v5871_v17  ;;  %v2178_v52 = vrot.slane %v6269_v48, %v5854_v6  ;;  %v2182_v51 = vrot.slane %v6269_v48, %v5857_v9  ;;  %v2186_v29 = vrot.slane %v6269_v48, %v5860_v10 }
 0x3e2   :  { %v4014_v30 = vcombine.low %v4006_v15, %v4013_v31  ;;  %v4096_v19 = vcombine.low %v4074_v26, %v4081_v55  ;;  %v2190_v22 = vrot.slane %v6269_v48, %v5863_v11  ;;  %v2194_v7 = vrot.slane %v6269_v48, %v5866_v13 }
 0x3e3   :  { %v4097_v32 = vcombine.low %v4088_v23, %v4095_v45  ;;  %v3868_v25 = vcombine.low %v2166_v44, %v2170_v14  ;;  %v3869_v38 = vcombine.low %v2174_v24, %v2178_v52  ;;  %v3870_v27 = vcombine.low %v2182_v51, %v2186_v29 }
 0x3e4   :  { %4685 = vperm.xlu1 %5295, %v4014_v30   ;;  %v4104_v36 = vrot.slane %v4096_v19, %v5871_v17  ;;  %v3871_v12 = vcombine.low %v2190_v22, %v2194_v7  ;;  %v2390_v2 = vrot.slane %v6464_v20, %v5842_v0  ;;  %v2394_v41 = vrot.slane %v6464_v20, %v5848_v3 }
 0x3e5   :  { %v4111_v42 = vrot.slane %v4097_v32, %v5871_v17  ;;  %v3878_v33 = vrot.slane %v3868_v25, %v5871_v17  ;;  %v3885_v48 = vrot.slane %v3869_v38, %v5871_v17  ;;  %v3892_v21 = vrot.slane %v3870_v27, %v5871_v17 }
 0x3e6   :  { %v3899_v47 = vrot.slane %v3871_v12, %v5871_v17  ;;  %v2398_v37 = vrot.slane %v6464_v20, %v5851_v5  ;;  %v2402_v49 = vrot.slane %v6464_v20, %v5854_v6  ;;  %v2406_v28 = vrot.slane %v6464_v20, %v5857_v9 }
 0x3e7   :  { %v4112_v4 = vcombine.low %v4104_v36, %v4111_v42  ;;  %v3900_v54 = vcombine.low %v3878_v33, %v3885_v48  ;;  %v2410_v40 = vrot.slane %v6464_v20, %v5860_v10  ;;  %v2414_v56 = vrot.slane %v6464_v20, %v5863_v11 }
 0x3e8   :  { %v3901_v57 = vcombine.low %v3892_v21, %v3899_v47  ;;  %v2418_v34 = vrot.slane %v6464_v20, %v5866_v13  ;;  %v4211_v59 = vcombine.low %v2390_v2, %v2394_v41  ;;  %v4212_v62 = vcombine.low %v2398_v37, %v2402_v49 }
 0x3e9   :  { %4691 = vperm.xlu0 %5294, %v4112_v4   ;;  %v3908_v39 = vrot.slane %v3900_v54, %v5871_v17  ;;  %v4213_v43 = vcombine.low %v2406_v28, %v2410_v40  ;;  %v2454_v1 = vrot.slane %v6414_v53, %v5842_v0  ;;  %v2458_v44 = vrot.slane %v6414_v53, %v5848_v3 }
 0x3ea   :  { %v3915_v15 = vrot.slane %v3901_v57, %v5871_v17  ;;  %v4214_v16 = vcombine.low %v2414_v56, %v2418_v34  ;;  %v4221_v26 = vrot.slane %v4211_v59, %v5871_v17  ;;  %v4228_v14 = vrot.slane %v4212_v62, %v5871_v17 }
 0x3eb   :  { %v4235_v20 = vrot.slane %v4213_v43, %v5871_v17  ;;  %v2462_v31 = vrot.slane %v6414_v53, %v5851_v5  ;;  %v2466_v55 = vrot.slane %v6414_v53, %v5854_v6  ;;  %v2470_v23 = vrot.slane %v6414_v53, %v5857_v9 }
 0x3ec   :  { %v3916_v24 = vcombine.low %v3908_v39, %v3915_v15  ;;  %v4242_v45 = vrot.slane %v4214_v16, %v5871_v17  ;;  %v4243_v52 = vcombine.low %v4221_v26, %v4228_v14  ;;  %v2474_v51 = vrot.slane %v6414_v53, %v5860_v10  ;;  %v6712_v16 = vpop.permute.xlu1 %4610 }
 0x3ed   :  { %v2478_v29 = vrot.slane %v6414_v53, %v5863_v11  ;;  %v2482_v30 = vrot.slane %v6414_v53, %v5866_v13  ;;  %v4309_v19 = vcombine.low %v2454_v1, %v2458_v44  ;;  %v4310_v22 = vcombine.low %v2462_v31, %v2466_v55 }
 0x3ee   :  { %4679 = vperm.xlu1 %5295, %v3916_v24   ;;  %v4244_v7 = vcombine.low %v4235_v20, %v4242_v45  ;;  %v4251_v32 = vrot.slane %v4243_v52, %v5871_v17  ;;  %v4311_v25 = vcombine.low %v2470_v23, %v2474_v51  ;;  %v2358_v38 = vrot.slane %v6319_v50, %v5842_v0 }
 0x3ef   :  { %v4312_v27 = vcombine.low %v2478_v29, %v2482_v30  ;;  %v4319_v36 = vrot.slane %v4309_v19, %v5871_v17  ;;  %v4326_v12 = vrot.slane %v4310_v22, %v5871_v17  ;;  %v2362_v2 = vrot.slane %v6319_v50, %v5848_v3 }
 0x3f0   :  { %v4258_v53 = vrot.slane %v4244_v7, %v5871_v17  ;;  %v4333_v41 = vrot.slane %v4311_v25, %v5871_v17  ;;  %v2366_v42 = vrot.slane %v6319_v50, %v5851_v5  ;;  %v2370_v33 = vrot.slane %v6319_v50, %v5854_v6 }
 0x3f1   :  { %v4340_v48 = vrot.slane %v4312_v27, %v5871_v17  ;;  %v4341_v21 = vcombine.low %v4319_v36, %v4326_v12  ;;  %v2374_v47 = vrot.slane %v6319_v50, %v5857_v9  ;;  %v2378_v37 = vrot.slane %v6319_v50, %v5860_v10 }
 0x3f2   :  { %v4259_v49 = vcombine.low %v4251_v32, %v4258_v53  ;;  %v2382_v28 = vrot.slane %v6319_v50, %v5863_v11  ;;  %v2386_v4 = vrot.slane %v6319_v50, %v5866_v13  ;;  %v4162_v54 = vcombine.low %v2358_v38, %v2362_v2 }
 0x3f3   :  { %v4342_v40 = vcombine.low %v4333_v41, %v4340_v48  ;;  %v4349_v56 = vrot.slane %v4341_v21, %v5871_v17  ;;  %v4163_v57 = vcombine.low %v2366_v42, %v2370_v33  ;;  %v4164_v34 = vcombine.low %v2374_v47, %v2378_v37  ;;  %v6741_v41 = vpop.permute.xlu1 %4604 }
 0x3f4   :  { %4700 = vperm.xlu0 %5294, %v4259_v49   ;;  %v4165_v59 = vcombine.low %v2382_v28, %v2386_v4  ;;  %v4172_v62 = vrot.slane %v4162_v54, %v5871_v17  ;;  %v2486_v39 = vrot.slane %v6419_v58, %v5842_v0  ;;  %v2490_v43 = vrot.slane %v6419_v58, %v5848_v3 }
 0x3f5   :  { %v4356_v1 = vrot.slane %v4342_v40, %v5871_v17  ;;  %v4179_v50 = vrot.slane %v4163_v57, %v5871_v17  ;;  %v4186_v44 = vrot.slane %v4164_v34, %v5871_v17  ;;  %v2494_v15 = vrot.slane %v6419_v58, %v5851_v5 }
 0x3f6   :  { %v4193_v26 = vrot.slane %v4165_v59, %v5871_v17  ;;  %v2498_v14 = vrot.slane %v6419_v58, %v5854_v6  ;;  %v2502_v20 = vrot.slane %v6419_v58, %v5857_v9  ;;  %v2506_v31 = vrot.slane %v6419_v58, %v5860_v10 }
 0x3f7   :  { %v4357_v55 = vcombine.low %v4349_v56, %v4356_v1  ;;  %v4194_v23 = vcombine.low %v4172_v62, %v4179_v50  ;;  %v2510_v24 = vrot.slane %v6419_v58, %v5863_v11  ;;  %v2514_v45 = vrot.slane %v6419_v58, %v5866_v13 }
 0x3f8   :  { %v4195_v52 = vcombine.low %v4186_v44, %v4193_v26  ;;  %v4358_v51 = vcombine.low %v2486_v39, %v2490_v43  ;;  %v4359_v29 = vcombine.low %v2494_v15, %v2498_v14  ;;  %v4360_v30 = vcombine.low %v2502_v20, %v2506_v31  ;;  %v6767_v14 = vpop.permute.xlu1 %4613 }
 0x3f9   :  { %4706 = vperm.xlu1 %5295, %v4357_v55   ;;  %v4202_v19 = vrot.slane %v4194_v23, %v5871_v17  ;;  %v4361_v22 = vcombine.low %v2510_v24, %v2514_v45  ;;  %v2582_v7 = vrot.slane %v6514_v35, %v5842_v0  ;;  %v2586_v32 = vrot.slane %v6514_v35, %v5848_v3 }
 0x3fa   :  { %v4209_v25 = vrot.slane %v4195_v52, %v5871_v17  ;;  %v4368_v38 = vrot.slane %v4358_v51, %v5871_v17  ;;  %v4375_v58 = vrot.slane %v4359_v29, %v5871_v17  ;;  %v4382_v27 = vrot.slane %v4360_v30, %v5871_v17 }
 0x3fb   :  { %v4389_v36 = vrot.slane %v4361_v22, %v5871_v17  ;;  %v2590_v12 = vrot.slane %v6514_v35, %v5851_v5  ;;  %v2594_v2 = vrot.slane %v6514_v35, %v5854_v6  ;;  %v2598_v53 = vrot.slane %v6514_v35, %v5857_v9 }
 0x3fc   :  { %v4210_v42 = vcombine.low %v4202_v19, %v4209_v25  ;;  %v4390_v33 = vcombine.low %v4368_v38, %v4375_v58  ;;  %v2602_v48 = vrot.slane %v6514_v35, %v5860_v10  ;;  %v2606_v21 = vrot.slane %v6514_v35, %v5863_v11 }
 0x3fd   :  { %v4391_v47 = vcombine.low %v4382_v27, %v4389_v36  ;;  %v2610_v37 = vrot.slane %v6514_v35, %v5866_v13  ;;  %v4505_v49 = vcombine.low %v2582_v7, %v2586_v32  ;;  %v4506_v28 = vcombine.low %v2590_v12, %v2594_v2 }
 0x3fe   :  { %4697 = vperm.xlu0 %5294, %v4210_v42   ;;  %v4398_v4 = vrot.slane %v4390_v33, %v5871_v17  ;;  %v4507_v54 = vcombine.low %v2598_v53, %v2602_v48  ;;  %v2422_v40 = vrot.slane %v6469_v63, %v5842_v0  ;;  %v2426_v56 = vrot.slane %v6469_v63, %v5848_v3  ;;  %v6795_v33 = vpop.permute.xlu1 %4607 }
 0x3ff   :  { %v4405_v57 = vrot.slane %v4391_v47, %v5871_v17  ;;  %v4508_v34 = vcombine.low %v2606_v21, %v2610_v37  ;;  %v4515_v59 = vrot.slane %v4505_v49, %v5871_v17  ;;  %v4522_v62 = vrot.slane %v4506_v28, %v5871_v17 }
 0x400   :  { %v4529_v35 = vrot.slane %v4507_v54, %v5871_v17  ;;  %v2430_v39 = vrot.slane %v6469_v63, %v5851_v5  ;;  %v2434_v43 = vrot.slane %v6469_v63, %v5854_v6  ;;  %v2438_v1 = vrot.slane %v6469_v63, %v5857_v9 }
 0x401   :  { %v4406_v50 = vcombine.low %v4398_v4, %v4405_v57  ;;  %v4536_v44 = vrot.slane %v4508_v34, %v5871_v17  ;;  %v4537_v15 = vcombine.low %v4515_v59, %v4522_v62  ;;  %v2442_v26 = vrot.slane %v6469_v63, %v5860_v10 }
 0x402   :  { %v2446_v20 = vrot.slane %v6469_v63, %v5863_v11  ;;  %v2450_v31 = vrot.slane %v6469_v63, %v5866_v13  ;;  %v4260_v55 = vcombine.low %v2422_v40, %v2426_v56  ;;  %v4261_v23 = vcombine.low %v2430_v39, %v2434_v43 }
 0x403   :  { %4709 = vperm.xlu1 %5295, %v4406_v50   ;;  %v4538_v24 = vcombine.low %v4529_v35, %v4536_v44  ;;  %v4545_v45 = vrot.slane %v4537_v15, %v5871_v17  ;;  %v4262_v52 = vcombine.low %v2438_v1, %v2442_v26  ;;  %v2518_v51 = vrot.slane %v6564_v46, %v5842_v0 }
 0x404   :  { %v4263_v29 = vcombine.low %v2446_v20, %v2450_v31  ;;  %v4270_v30 = vrot.slane %v4260_v55, %v5871_v17  ;;  %v4277_v19 = vrot.slane %v4261_v23, %v5871_v17  ;;  %v2522_v22 = vrot.slane %v6564_v46, %v5848_v3  ;;  %v6819_v31 = vpop.permute.xlu1 %4622 }
 0x405   :  { %v4552_v63 = vrot.slane %v4538_v24, %v5871_v17  ;;  %v4284_v7 = vrot.slane %v4262_v52, %v5871_v17  ;;  %v2526_v32 = vrot.slane %v6564_v46, %v5851_v5  ;;  %v2530_v25 = vrot.slane %v6564_v46, %v5854_v6 }
 0x406   :  { %v4291_v38 = vrot.slane %v4263_v29, %v5871_v17  ;;  %v4292_v58 = vcombine.low %v4270_v30, %v4277_v19  ;;  %v2534_v27 = vrot.slane %v6564_v46, %v5857_v9  ;;  %v2538_v36 = vrot.slane %v6564_v46, %v5860_v10 }
 0x407   :  { %v4553_v12 = vcombine.low %v4545_v45, %v4552_v63  ;;  %v2542_v2 = vrot.slane %v6564_v46, %v5863_v11  ;;  %v2546_v53 = vrot.slane %v6564_v46, %v5866_v13  ;;  %v4407_v42 = vcombine.low %v2518_v51, %v2522_v22 }
 0x408   :  { %v4293_v48 = vcombine.low %v4284_v7, %v4291_v38  ;;  %v4300_v21 = vrot.slane %v4292_v58, %v5871_v17  ;;  %v4408_v47 = vcombine.low %v2526_v32, %v2530_v25  ;;  %v4409_v37 = vcombine.low %v2534_v27, %v2538_v36  ;;  %v4617_v36 = vpop.permute.xlu1 %4616 }
 0x409   :  { %4718 = vperm.xlu0 %5294, %v4553_v12   ;;  %v4410_v49 = vcombine.low %v2542_v2, %v2546_v53  ;;  %v4417_v28 = vrot.slane %v4407_v42, %v5871_v17  ;;  %v2550_v4 = vrot.slane %v6569_v18, %v5842_v0  ;;  %v2554_v54 = vrot.slane %v6569_v18, %v5848_v3 }
 0x40a   :  { %v4307_v46 = vrot.slane %v4293_v48, %v5871_v17  ;;  %v4424_v40 = vrot.slane %v4408_v47, %v5871_v17  ;;  %v4431_v56 = vrot.slane %v4409_v37, %v5871_v17  ;;  %v2558_v57 = vrot.slane %v6569_v18, %v5851_v5 }
 0x40b   :  { %v4438_v34 = vrot.slane %v4410_v49, %v5871_v17  ;;  %v2562_v59 = vrot.slane %v6569_v18, %v5854_v6  ;;  %v2566_v62 = vrot.slane %v6569_v18, %v5857_v9  ;;  %v2570_v35 = vrot.slane %v6569_v18, %v5860_v10 }
 0x40c   :  { %v4308_v39 = vcombine.low %v4300_v21, %v4307_v46  ;;  %v4439_v43 = vcombine.low %v4417_v28, %v4424_v40  ;;  %v2574_v1 = vrot.slane %v6569_v18, %v5863_v11  ;;  %v2578_v50 = vrot.slane %v6569_v18, %v5866_v13  ;;  %v6866_v46 = vpop.permute.xlu1 %4625 }
 0x40d   :  { %v4440_v44 = vcombine.low %v4431_v56, %v4438_v34  ;;  %v4456_v15 = vcombine.low %v2550_v4, %v2554_v54  ;;  %v4457_v26 = vcombine.low %v2558_v57, %v2562_v59  ;;  %v4458_v20 = vcombine.low %v2566_v62, %v2570_v35 }
 0x40e   :  { %4703 = vperm.xlu1 %5295, %v4308_v39   ;;  %v4447_v55 = vrot.slane %v4439_v43, %v5871_v17  ;;  %v4459_v23 = vcombine.low %v2574_v1, %v2578_v50  ;;  %v2614_v24 = vrot.slane %v6519_v8, %v5842_v0  ;;  %v2618_v45 = vrot.slane %v6519_v8, %v5848_v3 }
 0x40f   :  { %v4454_v52 = vrot.slane %v4440_v44, %v5871_v17  ;;  %v4466_v18 = vrot.slane %v4456_v15, %v5871_v17  ;;  %v4473_v51 = vrot.slane %v4457_v26, %v5871_v17  ;;  %v4480_v29 = vrot.slane %v4458_v20, %v5871_v17 }
 0x410   :  { %v4487_v30 = vrot.slane %v4459_v23, %v5871_v17  ;;  %v2622_v19 = vrot.slane %v6519_v8, %v5851_v5  ;;  %v2626_v22 = vrot.slane %v6519_v8, %v5854_v6  ;;  %v2630_v0 = vrot.slane %v6519_v8, %v5857_v9  ;;  %v4620_v15 = vpop.permute.xlu1 %4619 }
 0x411   :  { %v4455_v3 = vcombine.low %v4447_v55, %v4454_v52  ;;  %v4488_v63 = vcombine.low %v4466_v18, %v4473_v51  ;;  %v2634_v7 = vrot.slane %v6519_v8, %v5860_v10  ;;  %v2638_v32 = vrot.slane %v6519_v8, %v5863_v11 }
 0x412   :  { %v4489_v25 = vcombine.low %v4480_v29, %v4487_v30  ;;  %v2642_v38 = vrot.slane %v6519_v8, %v5866_v13  ;;  %v4554_v58 = vcombine.low %v2614_v24, %v2618_v45  ;;  %v4555_v5 = vcombine.low %v2622_v19, %v2626_v22 }
 0x413   :  { %4712 = vperm.xlu1 %5295, %v4455_v3   ;;  %v4496_v6 = vrot.slane %v4488_v63, %v5871_v17  ;;  %v4556_v27 = vcombine.low %v2630_v0, %v2634_v7  ;;  %v6845_v9 = vand.u32 127, %v1279_v60 }
 0x414   :  { %v4503_v12 = vrot.slane %v4489_v25, %v5871_v17  ;;  %v4557_v10 = vcombine.low %v2638_v32, %v2642_v38  ;;  %v4564_v2 = vrot.slane %v4554_v58, %v5871_v17  ;;  %v4571_v11 = vrot.slane %v4555_v5, %v5871_v17  ;;  %v6906_v51 = vpop.permute.xlu1 %4637 }
 0x415   :  { %v4578_v53 = vrot.slane %v4556_v27, %v5871_v17  ;;  %v4736_v13 = vadd.s32 4294967280, %v6845_v9  ;;  %v6854_v8 = vsub.s32 %v6845_v9, %v5839_v61  ;;  %v4729_v47 = vadd.s32 4294967288, %v6845_v9 }
 0x416   :  { %v4504_v42 = vcombine.low %v4496_v6, %v4503_v12  ;;  %v4585_v48 = vrot.slane %v4557_v10, %v5871_v17  ;;  %v4586_v21 = vcombine.low %v4564_v2, %v4571_v11  ;;  %v4743_v37 = vadd.s32 4294967272, %v6845_v9 }
 0x417   :  { %v6861_v4 = vsub.s32 %v4729_v47, %v5839_v61  ;;  %v6864_v54 = vsub.s32 %v4736_v13, %v5839_v61  ;;  %v4728_v56 = vrot.slane %v6741_v41, %v6854_v8  ;;  %v4750_v34 = vadd.s32 4294967264, %v6845_v9 }
 0x418   :  { %4715 = vperm.xlu1 %5295, %v4504_v42   ;;  %v4587_v49 = vcombine.low %v4578_v53, %v4585_v48  ;;  %v4594_v28 = vrot.slane %v4586_v21, %v5871_v17  ;;  %v6875_v59 = vsub.s32 %v4743_v37, %v5839_v61  ;;  %v4764_v62 = vadd.s32 4294967248, %v6845_v9  ;;  %v6910_v30 = vpop.permute.xlu1 %4631 }
 0x419   :  { %v4733_v57 = vrot.slane %v6795_v33, %v6861_v4  ;;  %v6880_v43 = vsub.s32 %v4750_v34, %v5839_v61  ;;  %v4740_v41 = vrot.slane %v6712_v16, %v6864_v54  ;;  %v4757_v33 = vadd.s32 4294967256, %v6845_v9 }
 0x41a   :  { %v4601_v40 = vrot.slane %v4587_v49, %v5871_v17  ;;  %v6887_v50 = vsub.s32 %v4764_v62, %v5839_v61  ;;  %v4747_v26 = vrot.slane %v6767_v14, %v6875_v59  ;;  %v6902_v14 = vpop.permute.xlu0 %4634  ;;  %v4771_v37 = vadd.s32 4294967240, %v6845_v9 }
 0x41b   :  { %v4735_v39 = vsel %vm4734_vm2, %v4733_v57, %v4728_v56  ;;  %v4754_v44 = vrot.slane %v4617_v36, %v6880_v43  ;;  %v6893_v20 = vsub.s32 %v4757_v33, %v5839_v61  ;;  %v4778_v56 = vadd.s32 4294967232, %v6845_v9 }
 0x41c   :  { %v4602_v35 = vcombine.low %v4594_v28, %v4601_v40  ;;  %v4742_v1 = vsel %vm4741_vm3, %v4740_v41, %v4735_v39  ;;  %v4768_v23 = vrot.slane %v6819_v31, %v6887_v50  ;;  %v4785_v28 = vadd.s32 4294967224, %v6845_v9 }
 0x41d   :  { %v4749_v16 = vsel %vm4748_vm4, %v4747_v26, %v4742_v1  ;;  %v4761_v55 = vrot.slane %v4620_v15, %v6893_v20  ;;  %v6936_v34 = vsub.s32 %v4771_v37, %v5839_v61  ;;  %v4792_v1 = vadd.s32 4294967216, %v6845_v9 }
 0x41e   :  { %4721 = vperm.xlu1 %5295, %v4602_v35   ;;  %v4756_v24 = vsel %vm4755_vm5, %v4754_v44, %v4749_v16  ;;  %v6904_v18 = vpop.permute.xlu0 %4628  ;;  %v4788_v41 = vsub.s32 %v4785_v28, %v5839_v61  ;;  %v4781_v44 = vsub.s32 %v4778_v56, %v5839_v61 }
 0x41f   :  { %v4763_v45 = vsel %vm4762_vm6, %v4761_v55, %v4756_v24  ;;  %v4775_v55 = vrot.slane %v6866_v46, %v6936_v34  ;;  %v4795_v24 = vsub.s32 %v4792_v1, %v5839_v61 }
 0x420   :  { %v4770_v52 = vsel %vm4769_vm7, %v4768_v23, %v4763_v45  ;;  %v4799_v23 = vadd.s32 4294967208, %v6845_v9 }
 0x421   :  { %v6914_v22 = vpop.permute.xlu1 %4649 }
 0x422   :  { %v6908_v29 = vpop.permute.xlu0 %4646  ;;  %v4802_v46 = vsub.s32 %v4799_v23, %v5839_v61 }
 0x424   :  { %v4803_v37 = vrot.slane %v6906_v51, %v4802_v46 }
 0x426   :  { %v6912_v19 = vpop.permute.xlu0 %4640 }
 0x42a   :  { %v4659_v31 = vpop.permute.xlu0 %4658 }
 0x42b   :  { %v4846_v12 = vrot.slane %v4659_v31, %v6864_v54 }
 0x42c   :  { %v6916_v0 = vpop.permute.xlu1 %4643 }
 0x42e   :  { %v4653_v3 = vpop.permute.xlu0 %4652 }
 0x42f   :  { %v4837_v27 = vrot.slane %v4653_v3, %v6854_v8 }
 0x432   :  { %v4671_v7 = vpop.permute.xlu0 %4670 }
 0x433   :  { %v4866_v57 = vrot.slane %v4671_v7, %v6887_v50  ;;  %v4789_v7 = vrot.slane %v6910_v30, %v4788_v41 }
 0x436   :  { %v4665_v25 = vpop.permute.xlu0 %4664 }
 0x437   :  { %v4662_v63 = vpop.permute.xlu1 %4661  ;;  %v4856_v48 = vrot.slane %v4665_v25, %v6880_v43  ;;  %v4782_v25 = vrot.slane %v6904_v18, %v4781_v44 }
 0x438   :  { %v4851_v53 = vrot.slane %v4662_v63, %v6875_v59  ;;  %v4777_v63 = vsel %vm4776_vm8, %v4775_v55, %v4770_v52 }
 0x43c   :  { %v4683_v58 = vpop.permute.xlu0 %4682 }
 0x442   :  { %v4656_v32 = vpop.permute.xlu1 %4655 }
 0x443   :  { %v4841_v6 = vrot.slane %v4656_v32, %v6861_v4 }
 0x445   :  { %v4842_v36 = vsel %vm4734_vm2, %v4841_v6, %v4837_v27  ;;  %v4813_v6 = vadd.s32 4294967192, %v6845_v9  ;;  %v4784_v27 = vsel %vm4783_vm9, %v4782_v25, %v4777_v63 }
 0x446   :  { %v4847_v11 = vsel %vm4741_vm3, %v4846_v12, %v4842_v36  ;;  %v4791_v12 = vsel %vm4790_vm10, %v4789_v7, %v4784_v27 }
 0x447   :  { %v4677_v10 = vpop.permute.xlu0 %4676  ;;  %v4852_v13 = vsel %vm4748_vm4, %v4851_v53, %v4847_v11  ;;  %v4796_v11 = vrot.slane %v6902_v14, %v4795_v24  ;;  %v4816_v18 = vsub.s32 %v4813_v6, %v5839_v61 }
 0x448   :  { %v4857_v49 = vsel %vm4755_vm5, %v4856_v48, %v4852_v13  ;;  %v4876_v16 = vrot.slane %v4677_v10, %v4781_v44 }
 0x449   :  { %v4798_v48 = vsel %vm4797_vm11, %v4796_v11, %v4791_v12 }
 0x44a   :  { %v4805_v28 = vsel %vm4804_vm12, %v4803_v37, %v4798_v48 }
 0x44d   :  { %v4674_v38 = vpop.permute.xlu1 %4673 }
 0x44e   :  { %v4871_v33 = vrot.slane %v4674_v38, %v6936_v34  ;;  %v4806_v38 = vadd.s32 4294967200, %v6845_v9 }
 0x450   :  { %v4809_v52 = vsub.s32 %v4806_v38, %v5839_v61 }
 0x452   :  { %v6927_v21 = vpop.permute.xlu0 %4694 }
 0x458   :  { %v4668_v5 = vpop.permute.xlu1 %4667 }
 0x459   :  { %v4861_v42 = vrot.slane %v4668_v5, %v6893_v20  ;;  %v4886_v5 = vrot.slane %v4683_v58, %v4795_v24 }
 0x45b   :  { %v4862_v40 = vsel %vm4762_vm6, %v4861_v42, %v4857_v49  ;;  %v4820_v42 = vadd.s32 4294967184, %v6845_v9 }
 0x45c   :  { %v4867_v62 = vsel %vm4769_vm7, %v4866_v57, %v4862_v40  ;;  %v4817_v40 = vrot.slane %v6916_v0, %v4816_v18 }
 0x45d   :  { %v4689_v35 = vpop.permute.xlu0 %4688  ;;  %v4872_v15 = vsel %vm4776_vm8, %v4871_v33, %v4867_v62 }
 0x45e   :  { %v4877_v31 = vsel %vm4783_vm9, %v4876_v16, %v4872_v15 }
 0x463   :  { %v4686_v2 = vpop.permute.xlu1 %4685 }
 0x464   :  { %v4891_v10 = vrot.slane %v4686_v2, %v4802_v46  ;;  %v4827_v2 = vadd.s32 4294967176, %v6845_v9 }
 0x466   :  { %v4830_v9 = vsub.s32 %v4827_v2, %v5839_v61 }
 0x468   :  { %v4692_v45 = vpop.permute.xlu0 %4691 }
 0x469   :  { %v4901_v56 = vrot.slane %v4692_v45, %v4816_v18 }
 0x46d   :  { %v4680_v47 = vpop.permute.xlu1 %4679 }
 0x46e   :  { %v4881_v26 = vrot.slane %v4680_v47, %v4788_v41  ;;  %v4896_v47 = vrot.slane %v4689_v35, %v4809_v52  ;;  %v4810_v41 = vrot.slane %v6912_v19, %v4809_v52 }
 0x470   :  { %v4882_v32 = vsel %vm4790_vm10, %v4881_v26, %v4877_v31 }
 0x471   :  { %v4887_v36 = vsel %vm4797_vm11, %v4886_v5, %v4882_v32 }
 0x472   :  { %v4892_v13 = vsel %vm4804_vm12, %v4891_v10, %v4887_v36 }
 0x473   :  { %v4701_v30 = vpop.permute.xlu0 %4700  ;;  %v4897_v49 = vsel %vm4811_vm13, %v4896_v47, %v4892_v13 }
 0x474   :  { %v4916_v14 = vrot.slane %v4701_v30, %v6854_v8  ;;  %v4902_v33 = vsel %vm4818_vm14, %v4901_v56, %v4897_v49  ;;  %v4812_v8 = vsel %vm4811_vm13, %v4810_v41, %v4805_v28 }
 0x475   :  { %v4819_v44 = vsel %vm4818_vm14, %v4817_v40, %v4812_v8 }
 0x478   :  { %v4707_v39 = vpop.permute.xlu1 %4706 }
 0x479   :  { %v4925_v51 = vrot.slane %v4707_v39, %v6864_v54 }
 0x47d   :  { %v4698_v35 = vpop.permute.xlu0 %4697 }
 0x47e   :  { %v4911_v15 = vrot.slane %v4698_v35, %v4830_v9 }
 0x482   :  { %v4710_v3 = vpop.permute.xlu1 %4709 }
 0x483   :  { %v4930_v26 = vrot.slane %v4710_v3, %v6875_v59 }
 0x488   :  { %v4719_v45 = vpop.permute.xlu0 %4718 }
 0x489   :  { %v4945_v3 = vrot.slane %v4719_v45, %v6887_v50 }
 0x48d   :  { %v4704_v53 = vpop.permute.xlu1 %4703 }
 0x48e   :  { %v4920_v58 = vrot.slane %v4704_v53, %v6861_v4  ;;  %v4823_v4 = vsub.s32 %v4820_v42, %v5839_v61 }
 0x490   :  { %v4921_v57 = vsel %vm4734_vm2, %v4920_v58, %v4916_v14  ;;  %v4906_v1 = vrot.slane %v6927_v21, %v4823_v4  ;;  %v4824_v16 = vrot.slane %v6908_v29, %v4823_v4  ;;  %v4831_v21 = vrot.slane %v6914_v22, %v4830_v9 }
 0x491   :  { %v4926_v0 = vsel %vm4741_vm3, %v4925_v51, %v4921_v57 }
 0x492   :  { %v4713_v62 = vpop.permute.xlu1 %4712  ;;  %v4907_v19 = vsel %vm4825_vm15, %v4906_v1, %v4902_v33  ;;  %v4931_v39 = vsel %vm4748_vm4, %v4930_v26, %v4926_v0  ;;  %v4826_v23 = vsel %vm4825_vm15, %v4824_v16, %v4819_v44 }
 0x493   :  { %v4935_v55 = vrot.slane %v4713_v62, %v6880_v43  ;;  %v4912_v24 = vsel %vm4832_vm0, %v4911_v15, %v4907_v19  ;;  %v4833_v63 = vsel %vm4832_vm0, %v4831_v21, %v4826_v23 }
 0x494   :  { %v4952_v29 = vcombine.low %v4833_v63, %v4912_v24 }
 0x495   :  { %v4936_v31 = vsel %vm4755_vm5, %v4935_v55, %v4931_v39 }
 0x496   :  { %v4959_v22 = vrot.slane %v4952_v29, %v5871_v17 }
 0x497   :  { %v4716_v54 = vpop.permute.xlu1 %4715 }
 0x498   :  { %v4940_v61 = vrot.slane %v4716_v54, %v6893_v20 }
 0x49a   :  { %v4941_v59 = vsel %vm4762_vm6, %v4940_v61, %v4936_v31 }
 0x49b   :  { %v4946_v32 = vsel %vm4769_vm7, %v4945_v3, %v4941_v59 }
 0x49d   :  { %v4722_v43 = vpop.permute.xlu1 %4721 }
 0x49e   :  { %v4950_v7 = vrot.slane %v4722_v43, %v6936_v34 }
 0x4a0   :  { %v4951_v20 = vsel %vm4776_vm8, %v4950_v7, %v4946_v32 }
 0x4a1   :  { %v4966_v25 = vrot.slane %v4951_v20, %v5871_v17 }
 0x4a3   :  { %v4967_v38 = vcombine.low %v4959_v22, %v4966_v25 }
 0x4a5   :  { %v4974_v5 = vrot.slane %v4967_v38, %v5871_v17 }
 0x4a7   :  { %4980 = vst.msk [vmem:[#allocation3] sm:$0x7] %vm4978_vm1, %v4974_v5 }
 0x4a8   :  { %5323 = shalt.err (!%p5320_p4)
}
 0x4a9   :  { %s5324_s15 = scalar_lea.hbm %s7007_s9, 48 }
 0x4aa   :  { %p5325_p5 = scmp.ne.s32.totalorder %s7007_s9, %s5324_s15  ;;  %p5328_p6 = scmp.lt.u32.totalorder %s5324_s15, %s7007_s9 }
 0x4ac   :  { %p5330_p7 = pnand %p5328_p6, %p5325_p5 }
 0x4ae   :  { %5333 = shalt.err (!%p5330_p7)
}
 0x4af   :  { %4990 = dma.vmem_to_hbm [thread:$0]  %s4988_s7, 48, %s7007_s9, [#allocation4]  }
 0x4b0   :  { %5334 = dma.done.wait [#allocation4], 48  }
 0x4b1   :  { %5335 = vsyncadd [#allocation4], 4294967248 }
 0x4b2   :  { %4994 = vsyncpa [#allocation4], 1 }

</bundles_post_ra>
